<compile_context>
chip_gen: v7x
topology: tpu7x:2x2x1
jax: 0.10.0
libtpu: 0.0.40
codegen_flags: <defaults>
</compile_context>

<pallas_src>
import functools

import jax
import jax.numpy as jnp
from jax.experimental import pallas as pl
from jax.experimental.pallas import tpu as pltpu


def _vmem_capacity_bytes():
    try:
        cap = getattr(pltpu.get_tpu_info(), "vmem_capacity_bytes", None)
        if cap:
            return int(cap)
    except Exception:
        pass
    return 64 << 20  # conservative (v7x-sized) default


def _vmem_limit_bytes(block_f32_bytes):
    # Per-step footprint: double-buffered in+out blocks (~4x) plus ~3 blocks of
    # f32 temporaries (reflection copy / shifted view / accumulators).
    est = int(7.5 * block_f32_bytes) + (2 << 20)
    if est <= (32 << 20):
        return None  # default scoped VMEM limit is already enough
    return min(est, int(_vmem_capacity_bytes()) * 3 // 4)


def _pick_tile(dim, align, bytes_per_unit, target_bytes):
    """Largest tile that divides `dim`, is a multiple of `align` and stays near
    `target_bytes` (falls back to the full dim, always a legal block extent)."""
    want = max(align, target_bytes // max(1, bytes_per_unit))
    if dim <= want:
        return dim
    t = (want // align) * align
    while t >= align:
        if dim % t == 0:
            return t
        t -= align
    return dim


def _strip_body(x, o_ref, taps, *, K, pad, G, strip_last):
    """K-tap strip convolution with reflection padding along the strip axis.

    x     : (C, A, B) tile values (the full strip axis is resident).
    o_ref : (1, C, A, B) output block ref.
    taps  : list of G*K per-(group, tap) weights; each is either a scalar (SMEM
            read) or a (1, 1, 1) array (computed in-kernel) -- both broadcast
            cleanly against a (cg, A, B) tile.
    """
    C = x.shape[0]
    cg = C // G
    ax = 2 if strip_last else 1
    L = x.shape[ax]

    def sl(arr, start, size):
        if strip_last:
            return arr[:, :, start:start + size]
        return arr[:, start:start + size, :]

    # Reflection padding (PyTorch ReflectionPad2d: edge sample not repeated),
    # synthesized from boundary columns/rows already resident in the tile --
    # no HBM round-trip for the padded copy.
    if pad > 0:
        left = [sl(x, pad - p, 1) for p in range(pad)]       # x[pad], ..., x[1]
        right = [sl(x, L - 2 - q, 1) for q in range(pad)]    # x[L-2], ..., x[L-1-pad]
        xp = jnp.concatenate(left + [x] + right, axis=ax)    # strip length L + 2*pad
    else:
        xp = x

    # Taps outer / groups inner: only K shifted full-C views are materialized
    # (instead of G*K) and each is consumed immediately; accumulation happens
    # in-place into one f32 accumulator per group.
    accs = [None] * G
    for j in range(K):                                       # static unroll over taps
        shifted = x if j == pad else sl(xp, j, L)            # (C, A, B)
        for g in range(G):                                   # static unroll over groups
            term = shifted[g * cg:(g + 1) * cg].astype(jnp.float32) * taps[g * K + j]
            accs[g] = term if accs[g] is None else accs[g] + term
    for g in range(G):
        o_ref[0, g * cg:(g + 1) * cg] = accs[g].astype(o_ref.dtype)


def _fused_kernel(x_ref, w3_ref, o_ref, *, K, pad, G, strip_last):
    """Single-pass kernel: filter (avgpool -> 1x1 conv -> sigmoid) is computed
    from the resident tile, then the K-tap strip convolution is applied."""
    x = x_ref[0]                                             # (C, H, W)
    C, A, B = x.shape
    GK = G * K

    # Global average pool over the spatial dims (fully resident in this block).
    x32 = x.astype(jnp.float32)
    r1 = jnp.sum(x32, axis=2, keepdims=True)                 # (C, H, 1)
    pooled = jnp.sum(r1, axis=1, keepdims=True) * (1.0 / (A * B))   # (C, 1, 1)

    # 1x1 conv (no bias): logits[m] = sum_c w[m, c] * pooled[c].  w3 arrives
    # pre-transposed as (C, 1, G*K) so the contraction runs over the leading
    # (untiled) channel dim with a short unrolled add chain -- no relayouts.
    prod = w3_ref[...] * pooled                              # (C, 1, G*K)
    logits = prod[0]                                         # (1, G*K)
    for ci in range(1, C):
        logits = logits + prod[ci]
    f = jax.nn.sigmoid(logits)                               # (1, G*K)
    taps = [f[:, m:m + 1].reshape(1, 1, 1) for m in range(GK)]

    _strip_body(x, o_ref, taps, K=K, pad=pad, G=G, strip_last=strip_last)


def _tiled_kernel(f_ref, x_ref, o_ref, *, K, pad, G, strip_last):
    """Spatially tiled kernel; tap weights were precomputed in the wrapper and
    arrive via scalar prefetch (SMEM)."""
    base = pl.program_id(0) * (G * K)
    taps = [f_ref[base + i] for i in range(G * K)]
    _strip_body(x_ref[0], o_ref, taps, K=K, pad=pad, G=G, strip_last=strip_last)


def spatial_strip_att(x, w_conv, *, kernel=5, group=2, H_dir=True,
                      max_block_bytes=None):
    """x: (n, c, h, w); w_conv: (group*kernel, c) 1x1-conv weight (no bias)."""
    n, c, h, w = x.shape
    pad = kernel // 2
    assert c % group == 0
    assert w_conv.shape == (group * kernel, c)
    strip_len = w if H_dir else h
    assert strip_len > pad, "reflection padding needs strip length > kernel//2"

    itemsize = x.dtype.itemsize
    img_bytes = c * h * w * itemsize
    cap = _vmem_capacity_bytes()
    # Generation-aware per-block byte target (keeps double-buffered in/out blocks
    # plus f32 temporaries well inside VMEM: 128 MiB on v5e/v6e, 64 MiB on v7x).
    budget = max_block_bytes if max_block_bytes is not None else cap // 20

    kern_kwargs = dict(K=kernel, pad=pad, G=group, strip_last=H_dir)
    out_shape = jax.ShapeDtypeStruct((n, c, h, w), x.dtype)

    if img_bytes <= budget:
        # Single HBM pass: filter computed inside the kernel from the resident
        # (c, h, w) block; w_conv (tiny) rides along pre-transposed as (c,1,g*k).
        # TODO(synk): when n == 1 on a 2-TensorCore part (v7x) this leaves one
        # core idle; engaging both would require the two-pass tiled path below.
        w3 = jnp.asarray(w_conv, jnp.float32).T.reshape(c, 1, group * kernel)
        blk = (1, c, h, w)
        idx = lambda b: (b, 0, 0, 0)
        try:
            return pl.pallas_call(
                functools.partial(_fused_kernel, **kern_kwargs),
                out_shape=out_shape,
                grid=(n,),
                in_specs=[pl.BlockSpec(blk, idx),
                          pl.BlockSpec((c, 1, group * kernel),
                                       lambda b: (0, 0, 0))],
                out_specs=pl.BlockSpec(blk, idx),
                compiler_params=pltpu.CompilerParams(
                    dimension_semantics=("parallel",),
                    vmem_limit_bytes=_vmem_limit_bytes(c * h * w * 4)),
            )(x, w3)
        except Exception:
            # Conservative guard: if this configuration hits an unsupported
            # lowering corner, fall through to the two-pass tiled path.
            pass

    # Tiled fallback: the tiny (n, group*kernel) filter is computed by XLA and
    # passed via scalar prefetch; this costs one extra HBM read of x, so it is
    # only used when a whole image cannot stay resident in VMEM.
    pooled = jnp.mean(x.astype(jnp.float32), axis=(2, 3))               # (n, c)
    f = jax.nn.sigmoid(pooled @ jnp.asarray(w_conv, jnp.float32).T)     # (n, g*k)
    f_flat = f.reshape(-1)                                              # SMEM prefetch

    if H_dir:
        # Strip along W (lanes, fully in-block); tile over H (sublane axis).
        sub_align = {4: 8, 2: 16, 1: 32}.get(itemsize, 8)    # dtype-aware packing
        tile = _pick_tile(h, sub_align, c * w * itemsize, budget)
        grid = (n, h // tile)
        blk = (1, c, tile, w)
        idx = lambda b, t, f_s: (b, 0, t, 0)
        blk_f32_bytes = c * tile * w * 4
    else:
        # Strip along H (sublanes, fully in-block); tile over W (lane axis).
        tile = _pick_tile(w, 128, c * h * itemsize, budget)
        grid = (n, w // tile)
        blk = (1, c, h, tile)
        idx = lambda b, t, f_s: (b, 0, 0, t)
        blk_f32_bytes = c * h * tile * 4

    # The block must cover the full strip axis (required by the in-kernel
    # reflection padding).
    assert blk[3 if H_dir else 2] == (w if H_dir else h)

    return pl.pallas_call(
        functools.partial(_tiled_kernel, **kern_kwargs),
        out_shape=out_shape,
        grid_spec=pltpu.PrefetchScalarGridSpec(
            num_scalar_prefetch=1,
            grid=grid,
            in_specs=[pl.BlockSpec(blk, idx)],
            out_specs=pl.BlockSpec(blk, idx),
        ),
        compiler_params=pltpu.CompilerParams(
            dimension_semantics=("parallel", "parallel"),
            vmem_limit_bytes=_vmem_limit_bytes(blk_f32_bytes)),
    )(f_flat, x)


def reference(x, w_conv, kernel=5, group=2, H_dir=True):
    """Pure-JAX transcription of the PyTorch forward."""
    n, c, h, w = x.shape
    pad = kernel // 2
    pooled = jnp.mean(x, axis=(2, 3))                                   # (n, c)
    f = jax.nn.sigmoid(pooled @ w_conv.T).reshape(n, group, 1, kernel, 1)
    if H_dir:
        xp = jnp.pad(x, ((0, 0), (0, 0), (0, 0), (pad, pad)), mode="reflect")
        cols = jnp.stack([xp[:, :, :, j:j + w] for j in range(kernel)], axis=2)
    else:
        xp = jnp.pad(x, ((0, 0), (0, 0), (pad, pad), (0, 0)), mode="reflect")
        cols = jnp.stack([xp[:, :, j:j + h, :] for j in range(kernel)], axis=2)
    cols = cols.reshape(n, group, c // group, kernel, h * w)
    return jnp.sum(cols * f, axis=3).reshape(n, c, h, w)


if __name__ == "__main__":
    N, C, H, W = 2, 4, 16, 16
    KERNEL, GROUP = 5, 2

    key = jax.random.PRNGKey(0)
    k1, k2 = jax.random.split(key)
    x = jax.random.normal(k1, (N, C, H, W), dtype=jnp.float32)
    # Deterministic synthetic 1x1-conv weight (dim -> group*kernel, no bias).
    w_conv = 0.1 * jax.random.normal(k2, (GROUP * KERNEL, C), dtype=jnp.float32)

    for h_dir in (True, False):
        # blk_budget=None -> fused single-pass path; 256 bytes -> forces the
        # spatially tiled scalar-prefetch fallback, so both paths are exercised.
        for blk_budget in (None, 256):
            out = spatial_strip_att(x, w_conv, kernel=KERNEL, group=GROUP,
                                    H_dir=h_dir, max_block_bytes=blk_budget)
            out = jax.block_until_ready(out)
            ref = reference(x, w_conv, kernel=KERNEL, group=GROUP, H_dir=h_dir)
            assert out.shape == (N, C, H, W), out.shape
            max_err = float(jnp.max(jnp.abs(out - ref)))
            assert max_err < 1e-4, (h_dir, blk_budget, max_err)

    print("KERNEL_OK")
</pallas_src>

<mosaic_0001>
module attributes {stable_mosaic.version = 11 : i64} {
  func.func @_fused_kernel(%arg0: i32, %arg1: memref<1x4x16x16xf32, #tpu.memory_space<vmem>>, %arg2: memref<4x1x10xf32, #tpu.memory_space<vmem>>, %arg3: memref<1x4x16x16xf32, #tpu.memory_space<vmem>>) attributes {dimension_semantics = [#tpu.dimension_semantics<parallel>], iteration_bounds = array<i64: 2>, scalar_prefetch = 0 : i64, scratch_operands = 0 : i64, tpu.core_type = #tpu.core_type<tc>, window_params = [{transform_indices = @transform_0, window_bounds = array<i64: 1, 4, 16, 16>}, {pipeline_mode = #tpu.pipeline_mode<synchronous>, transform_indices = @transform_1, window_bounds = array<i64: 4, 1, 10>}, {transform_indices = @transform_2, window_bounds = array<i64: 1, 4, 16, 16>}]} {
    %c0 = arith.constant 0 : index
    %c0_0 = arith.constant 0 : index
    %c0_1 = arith.constant 0 : index
    %c0_2 = arith.constant 0 : index
    %0 = vector.load %arg1[%c0, %c0_0, %c0_1, %c0_2] : memref<1x4x16x16xf32, #tpu.memory_space<vmem>>, vector<1x4x16x16xf32>
    %1 = vector.shape_cast %0 : vector<1x4x16x16xf32> to vector<4x16x16xf32>
    %cst = arith.constant dense<0.000000e+00> : vector<4x16xf32>
    %2 = vector.multi_reduction <add>, %1, %cst [2] : vector<4x16x16xf32> to vector<4x16xf32>
    %3 = vector.shape_cast %2 : vector<4x16xf32> to vector<4x16x1xf32>
    %cst_3 = arith.constant dense<0.000000e+00> : vector<4x1xf32>
    %4 = vector.multi_reduction <add>, %3, %cst_3 [1] : vector<4x16x1xf32> to vector<4x1xf32>
    %5 = vector.shape_cast %4 : vector<4x1xf32> to vector<4x1x1xf32>
    %cst_4 = arith.constant 3.906250e-03 : f32
    %6 = vector.broadcast %cst_4 : f32 to vector<4x1x1xf32>
    %7 = arith.mulf %5, %6 : vector<4x1x1xf32>
    %c0_5 = arith.constant 0 : index
    %c0_6 = arith.constant 0 : index
    %c0_7 = arith.constant 0 : index
    %8 = vector.load %arg2[%c0_5, %c0_6, %c0_7] : memref<4x1x10xf32, #tpu.memory_space<vmem>>, vector<4x1x10xf32>
    %9 = vector.broadcast %7 : vector<4x1x1xf32> to vector<4x1x10xf32>
    %10 = arith.mulf %8, %9 : vector<4x1x10xf32>
    %11 = vector.extract_strided_slice %10 {offsets = [0, 0, 0], sizes = [1, 1, 10], strides = [1, 1, 1]} : vector<4x1x10xf32> to vector<1x1x10xf32>
    %12 = vector.shape_cast %11 : vector<1x1x10xf32> to vector<1x10xf32>
    %13 = vector.extract_strided_slice %10 {offsets = [1, 0, 0], sizes = [1, 1, 10], strides = [1, 1, 1]} : vector<4x1x10xf32> to vector<1x1x10xf32>
    %14 = vector.shape_cast %13 : vector<1x1x10xf32> to vector<1x10xf32>
    %15 = arith.addf %12, %14 : vector<1x10xf32>
    %16 = vector.extract_strided_slice %10 {offsets = [2, 0, 0], sizes = [1, 1, 10], strides = [1, 1, 1]} : vector<4x1x10xf32> to vector<1x1x10xf32>
    %17 = vector.shape_cast %16 : vector<1x1x10xf32> to vector<1x10xf32>
    %18 = arith.addf %15, %17 : vector<1x10xf32>
    %19 = vector.extract_strided_slice %10 {offsets = [3, 0, 0], sizes = [1, 1, 10], strides = [1, 1, 1]} : vector<4x1x10xf32> to vector<1x1x10xf32>
    %20 = vector.shape_cast %19 : vector<1x1x10xf32> to vector<1x10xf32>
    %21 = arith.addf %18, %20 : vector<1x10xf32>
    %22 = arith.negf %21 : vector<1x10xf32>
    %23 = math.exp %22 : vector<1x10xf32>
    %cst_8 = arith.constant 1.000000e+00 : f32
    %24 = vector.broadcast %cst_8 : f32 to vector<1x10xf32>
    %25 = arith.addf %24, %23 : vector<1x10xf32>
    %26 = arith.divf %24, %25 : vector<1x10xf32>
    %27 = vector.extract_strided_slice %26 {offsets = [0, 0], sizes = [1, 1], strides = [1, 1]} : vector<1x10xf32> to vector<1x1xf32>
    %28 = vector.shape_cast %27 : vector<1x1xf32> to vector<1x1x1xf32>
    %29 = vector.extract_strided_slice %26 {offsets = [0, 1], sizes = [1, 1], strides = [1, 1]} : vector<1x10xf32> to vector<1x1xf32>
    %30 = vector.shape_cast %29 : vector<1x1xf32> to vector<1x1x1xf32>
    %31 = vector.extract_strided_slice %26 {offsets = [0, 2], sizes = [1, 1], strides = [1, 1]} : vector<1x10xf32> to vector<1x1xf32>
    %32 = vector.shape_cast %31 : vector<1x1xf32> to vector<1x1x1xf32>
    %33 = vector.extract_strided_slice %26 {offsets = [0, 3], sizes = [1, 1], strides = [1, 1]} : vector<1x10xf32> to vector<1x1xf32>
    %34 = vector.shape_cast %33 : vector<1x1xf32> to vector<1x1x1xf32>
    %35 = vector.extract_strided_slice %26 {offsets = [0, 4], sizes = [1, 1], strides = [1, 1]} : vector<1x10xf32> to vector<1x1xf32>
    %36 = vector.shape_cast %35 : vector<1x1xf32> to vector<1x1x1xf32>
    %37 = vector.extract_strided_slice %26 {offsets = [0, 5], sizes = [1, 1], strides = [1, 1]} : vector<1x10xf32> to vector<1x1xf32>
    %38 = vector.shape_cast %37 : vector<1x1xf32> to vector<1x1x1xf32>
    %39 = vector.extract_strided_slice %26 {offsets = [0, 6], sizes = [1, 1], strides = [1, 1]} : vector<1x10xf32> to vector<1x1xf32>
    %40 = vector.shape_cast %39 : vector<1x1xf32> to vector<1x1x1xf32>
    %41 = vector.extract_strided_slice %26 {offsets = [0, 7], sizes = [1, 1], strides = [1, 1]} : vector<1x10xf32> to vector<1x1xf32>
    %42 = vector.shape_cast %41 : vector<1x1xf32> to vector<1x1x1xf32>
    %43 = vector.extract_strided_slice %26 {offsets = [0, 8], sizes = [1, 1], strides = [1, 1]} : vector<1x10xf32> to vector<1x1xf32>
    %44 = vector.shape_cast %43 : vector<1x1xf32> to vector<1x1x1xf32>
    %45 = vector.extract_strided_slice %26 {offsets = [0, 9], sizes = [1, 1], strides = [1, 1]} : vector<1x10xf32> to vector<1x1xf32>
    %46 = vector.shape_cast %45 : vector<1x1xf32> to vector<1x1x1xf32>
    %47 = vector.extract_strided_slice %1 {offsets = [0, 0, 2], sizes = [4, 16, 1], strides = [1, 1, 1]} : vector<4x16x16xf32> to vector<4x16x1xf32>
    %48 = vector.extract_strided_slice %1 {offsets = [0, 0, 1], sizes = [4, 16, 1], strides = [1, 1, 1]} : vector<4x16x16xf32> to vector<4x16x1xf32>
    %49 = vector.extract_strided_slice %1 {offsets = [0, 0, 14], sizes = [4, 16, 1], strides = [1, 1, 1]} : vector<4x16x16xf32> to vector<4x16x1xf32>
    %50 = vector.extract_strided_slice %1 {offsets = [0, 0, 13], sizes = [4, 16, 1], strides = [1, 1, 1]} : vector<4x16x16xf32> to vector<4x16x1xf32>
    %51 = tpu.concatenate %47, %48, %1, %49, %50 in 2 : vector<4x16x1xf32>, vector<4x16x1xf32>, vector<4x16x16xf32>, vector<4x16x1xf32>, vector<4x16x1xf32> -> vector<4x16x20xf32>
    %52 = vector.extract_strided_slice %51 {offsets = [0, 0, 0], sizes = [4, 16, 16], strides = [1, 1, 1]} : vector<4x16x20xf32> to vector<4x16x16xf32>
    %53 = vector.extract_strided_slice %52 {offsets = [0, 0, 0], sizes = [2, 16, 16], strides = [1, 1, 1]} : vector<4x16x16xf32> to vector<2x16x16xf32>
    %54 = vector.broadcast %28 : vector<1x1x1xf32> to vector<2x16x16xf32>
    %55 = arith.mulf %53, %54 : vector<2x16x16xf32>
    %56 = vector.extract_strided_slice %52 {offsets = [2, 0, 0], sizes = [2, 16, 16], strides = [1, 1, 1]} : vector<4x16x16xf32> to vector<2x16x16xf32>
    %57 = vector.broadcast %38 : vector<1x1x1xf32> to vector<2x16x16xf32>
    %58 = arith.mulf %56, %57 : vector<2x16x16xf32>
    %59 = vector.extract_strided_slice %51 {offsets = [0, 0, 1], sizes = [4, 16, 16], strides = [1, 1, 1]} : vector<4x16x20xf32> to vector<4x16x16xf32>
    %60 = vector.extract_strided_slice %59 {offsets = [0, 0, 0], sizes = [2, 16, 16], strides = [1, 1, 1]} : vector<4x16x16xf32> to vector<2x16x16xf32>
    %61 = vector.broadcast %30 : vector<1x1x1xf32> to vector<2x16x16xf32>
    %62 = arith.mulf %60, %61 : vector<2x16x16xf32>
    %63 = arith.addf %55, %62 : vector<2x16x16xf32>
    %64 = vector.extract_strided_slice %59 {offsets = [2, 0, 0], sizes = [2, 16, 16], strides = [1, 1, 1]} : vector<4x16x16xf32> to vector<2x16x16xf32>
    %65 = vector.broadcast %40 : vector<1x1x1xf32> to vector<2x16x16xf32>
    %66 = arith.mulf %64, %65 : vector<2x16x16xf32>
    %67 = arith.addf %58, %66 : vector<2x16x16xf32>
    %68 = vector.extract_strided_slice %1 {offsets = [0, 0, 0], sizes = [2, 16, 16], strides = [1, 1, 1]} : vector<4x16x16xf32> to vector<2x16x16xf32>
    %69 = vector.broadcast %32 : vector<1x1x1xf32> to vector<2x16x16xf32>
    %70 = arith.mulf %68, %69 : vector<2x16x16xf32>
    %71 = arith.addf %63, %70 : vector<2x16x16xf32>
    %72 = vector.extract_strided_slice %1 {offsets = [2, 0, 0], sizes = [2, 16, 16], strides = [1, 1, 1]} : vector<4x16x16xf32> to vector<2x16x16xf32>
    %73 = vector.broadcast %42 : vector<1x1x1xf32> to vector<2x16x16xf32>
    %74 = arith.mulf %72, %73 : vector<2x16x16xf32>
    %75 = arith.addf %67, %74 : vector<2x16x16xf32>
    %76 = vector.extract_strided_slice %51 {offsets = [0, 0, 3], sizes = [4, 16, 16], strides = [1, 1, 1]} : vector<4x16x20xf32> to vector<4x16x16xf32>
    %77 = vector.extract_strided_slice %76 {offsets = [0, 0, 0], sizes = [2, 16, 16], strides = [1, 1, 1]} : vector<4x16x16xf32> to vector<2x16x16xf32>
    %78 = vector.broadcast %34 : vector<1x1x1xf32> to vector<2x16x16xf32>
    %79 = arith.mulf %77, %78 : vector<2x16x16xf32>
    %80 = arith.addf %71, %79 : vector<2x16x16xf32>
    %81 = vector.extract_strided_slice %76 {offsets = [2, 0, 0], sizes = [2, 16, 16], strides = [1, 1, 1]} : vector<4x16x16xf32> to vector<2x16x16xf32>
    %82 = vector.broadcast %44 : vector<1x1x1xf32> to vector<2x16x16xf32>
    %83 = arith.mulf %81, %82 : vector<2x16x16xf32>
    %84 = arith.addf %75, %83 : vector<2x16x16xf32>
    %85 = vector.extract_strided_slice %51 {offsets = [0, 0, 4], sizes = [4, 16, 16], strides = [1, 1, 1]} : vector<4x16x20xf32> to vector<4x16x16xf32>
    %86 = vector.extract_strided_slice %85 {offsets = [0, 0, 0], sizes = [2, 16, 16], strides = [1, 1, 1]} : vector<4x16x16xf32> to vector<2x16x16xf32>
    %87 = vector.broadcast %36 : vector<1x1x1xf32> to vector<2x16x16xf32>
    %88 = arith.mulf %86, %87 : vector<2x16x16xf32>
    %89 = arith.addf %80, %88 : vector<2x16x16xf32>
    %90 = vector.extract_strided_slice %85 {offsets = [2, 0, 0], sizes = [2, 16, 16], strides = [1, 1, 1]} : vector<4x16x16xf32> to vector<2x16x16xf32>
    %91 = vector.broadcast %46 : vector<1x1x1xf32> to vector<2x16x16xf32>
    %92 = arith.mulf %90, %91 : vector<2x16x16xf32>
    %93 = arith.addf %84, %92 : vector<2x16x16xf32>
    %c0_9 = arith.constant 0 : index
    %c0_10 = arith.constant 0 : index
    %c0_11 = arith.constant 0 : index
    %c0_12 = arith.constant 0 : index
    %94 = vector.load %arg3[%c0_9, %c0_10, %c0_11, %c0_12] : memref<1x4x16x16xf32, #tpu.memory_space<vmem>>, vector<1x2x16x16xf32>
    %95 = vector.shape_cast %94 : vector<1x2x16x16xf32> to vector<2x16x16xf32>
    %96 = vector.shape_cast %89 : vector<2x16x16xf32> to vector<1x2x16x16xf32>
    tpu.vector_store %arg3[%c0_9, %c0_10, %c0_11, %c0_12], %96 {strides = array<i32>} : memref<1x4x16x16xf32, #tpu.memory_space<vmem>>, vector<1x2x16x16xf32>,
    %c0_13 = arith.constant 0 : index
    %c2 = arith.constant 2 : index
    %c0_14 = arith.constant 0 : index
    %c0_15 = arith.constant 0 : index
    %97 = vector.load %arg3[%c0_13, %c2, %c0_14, %c0_15] : memref<1x4x16x16xf32, #tpu.memory_space<vmem>>, vector<1x2x16x16xf32>
    %98 = vector.shape_cast %97 : vector<1x2x16x16xf32> to vector<2x16x16xf32>
    %99 = vector.shape_cast %93 : vector<2x16x16xf32> to vector<1x2x16x16xf32>
    tpu.vector_store %arg3[%c0_13, %c2, %c0_14, %c0_15], %99 {strides = array<i32>} : memref<1x4x16x16xf32, #tpu.memory_space<vmem>>, vector<1x2x16x16xf32>,
    return
  }
  func.func @transform_0(%arg0: i32) -> (i32, i32, i32, i32) {
    %c0_i32 = arith.constant 0 : i32
    %c0_i32_0 = arith.constant 0 : i32
    %c0_i32_1 = arith.constant 0 : i32
    %c0_i32_2 = arith.constant 0 : i32
    return %arg0, %c0_i32, %c0_i32_0, %c0_i32_1 : i32, i32, i32, i32
  }
  func.func @transform_1(%arg0: i32) -> (i32, i32, i32) {
    %c0_i32 = arith.constant 0 : i32
    %c0_i32_0 = arith.constant 0 : i32
    %c0_i32_1 = arith.constant 0 : i32
    %c0_i32_2 = arith.constant 0 : i32
    return %c0_i32, %c0_i32_0, %c0_i32_1 : i32, i32, i32
  }
  func.func @transform_2(%arg0: i32) -> (i32, i32, i32, i32) {
    %c0_i32 = arith.constant 0 : i32
    %c0_i32_0 = arith.constant 0 : i32
    %c0_i32_1 = arith.constant 0 : i32
    %c0_i32_2 = arith.constant 0 : i32
    return %arg0, %c0_i32, %c0_i32_0, %c0_i32_1 : i32, i32, i32, i32
  }
}

module attributes {stable_mosaic.version = 11 : i64} {
  func.func @_tiled_kernel(%arg0: i32, %arg1: i32, %arg2: memref<20xf32, #tpu.memory_space<smem>>, %arg3: memref<1x4x16x16xf32, #tpu.memory_space<vmem>>, %arg4: memref<1x4x16x16xf32, #tpu.memory_space<vmem>>) attributes {dimension_semantics = [#tpu.dimension_semantics<parallel>, #tpu.dimension_semantics<parallel>], iteration_bounds = array<i64: 2, 1>, scalar_prefetch = 1 : i64, scratch_operands = 0 : i64, tpu.core_type = #tpu.core_type<tc>, window_params = [{transform_indices = @transform_0, window_bounds = array<i64: 1, 4, 16, 16>}, {transform_indices = @transform_1, window_bounds = array<i64: 1, 4, 16, 16>}]} {
    %c10_i32 = arith.constant 10 : i32
    %0 = arith.muli %arg0, %c10_i32 : i32
    %c0_i32 = arith.constant 0 : i32
    %1 = arith.addi %0, %c0_i32 : i32
    %2 = arith.index_cast %1 : i32 to index
    %3 = memref.load %arg2[%2] : memref<20xf32, #tpu.memory_space<smem>>
    %c1_i32 = arith.constant 1 : i32
    %4 = arith.addi %0, %c1_i32 : i32
    %5 = arith.index_cast %4 : i32 to index
    %6 = memref.load %arg2[%5] : memref<20xf32, #tpu.memory_space<smem>>
    %c2_i32 = arith.constant 2 : i32
    %7 = arith.addi %0, %c2_i32 : i32
    %8 = arith.index_cast %7 : i32 to index
    %9 = memref.load %arg2[%8] : memref<20xf32, #tpu.memory_space<smem>>
    %c3_i32 = arith.constant 3 : i32
    %10 = arith.addi %0, %c3_i32 : i32
    %11 = arith.index_cast %10 : i32 to index
    %12 = memref.load %arg2[%11] : memref<20xf32, #tpu.memory_space<smem>>
    %c4_i32 = arith.constant 4 : i32
    %13 = arith.addi %0, %c4_i32 : i32
    %14 = arith.index_cast %13 : i32 to index
    %15 = memref.load %arg2[%14] : memref<20xf32, #tpu.memory_space<smem>>
    %c5_i32 = arith.constant 5 : i32
    %16 = arith.addi %0, %c5_i32 : i32
    %17 = arith.index_cast %16 : i32 to index
    %18 = memref.load %arg2[%17] : memref<20xf32, #tpu.memory_space<smem>>
    %c6_i32 = arith.constant 6 : i32
    %19 = arith.addi %0, %c6_i32 : i32
    %20 = arith.index_cast %19 : i32 to index
    %21 = memref.load %arg2[%20] : memref<20xf32, #tpu.memory_space<smem>>
    %c7_i32 = arith.constant 7 : i32
    %22 = arith.addi %0, %c7_i32 : i32
    %23 = arith.index_cast %22 : i32 to index
    %24 = memref.load %arg2[%23] : memref<20xf32, #tpu.memory_space<smem>>
    %c8_i32 = arith.constant 8 : i32
    %25 = arith.addi %0, %c8_i32 : i32
    %26 = arith.index_cast %25 : i32 to index
    %27 = memref.load %arg2[%26] : memref<20xf32, #tpu.memory_space<smem>>
    %c9_i32 = arith.constant 9 : i32
    %28 = arith.addi %0, %c9_i32 : i32
    %29 = arith.index_cast %28 : i32 to index
    %30 = memref.load %arg2[%29] : memref<20xf32, #tpu.memory_space<smem>>
    %c0 = arith.constant 0 : index
    %c0_0 = arith.constant 0 : index
    %c0_1 = arith.constant 0 : index
    %c0_2 = arith.constant 0 : index
    %31 = vector.load %arg3[%c0, %c0_0, %c0_1, %c0_2] : memref<1x4x16x16xf32, #tpu.memory_space<vmem>>, vector<1x4x16x16xf32>
    %32 = vector.shape_cast %31 : vector<1x4x16x16xf32> to vector<4x16x16xf32>
    %33 = vector.extract_strided_slice %32 {offsets = [0, 0, 2], sizes = [4, 16, 1], strides = [1, 1, 1]} : vector<4x16x16xf32> to vector<4x16x1xf32>
    %34 = vector.extract_strided_slice %32 {offsets = [0, 0, 1], sizes = [4, 16, 1], strides = [1, 1, 1]} : vector<4x16x16xf32> to vector<4x16x1xf32>
    %35 = vector.extract_strided_slice %32 {offsets = [0, 0, 14], sizes = [4, 16, 1], strides = [1, 1, 1]} : vector<4x16x16xf32> to vector<4x16x1xf32>
    %36 = vector.extract_strided_slice %32 {offsets = [0, 0, 13], sizes = [4, 16, 1], strides = [1, 1, 1]} : vector<4x16x16xf32> to vector<4x16x1xf32>
    %37 = tpu.concatenate %33, %34, %32, %35, %36 in 2 : vector<4x16x1xf32>, vector<4x16x1xf32>, vector<4x16x16xf32>, vector<4x16x1xf32>, vector<4x16x1xf32> -> vector<4x16x20xf32>
    %38 = vector.extract_strided_slice %37 {offsets = [0, 0, 0], sizes = [4, 16, 16], strides = [1, 1, 1]} : vector<4x16x20xf32> to vector<4x16x16xf32>
    %39 = vector.extract_strided_slice %38 {offsets = [0, 0, 0], sizes = [2, 16, 16], strides = [1, 1, 1]} : vector<4x16x16xf32> to vector<2x16x16xf32>
    %40 = vector.broadcast %3 : f32 to vector<2x16x16xf32>
    %41 = arith.mulf %39, %40 : vector<2x16x16xf32>
    %42 = vector.extract_strided_slice %38 {offsets = [2, 0, 0], sizes = [2, 16, 16], strides = [1, 1, 1]} : vector<4x16x16xf32> to vector<2x16x16xf32>
    %43 = vector.broadcast %18 : f32 to vector<2x16x16xf32>
    %44 = arith.mulf %42, %43 : vector<2x16x16xf32>
    %45 = vector.extract_strided_slice %37 {offsets = [0, 0, 1], sizes = [4, 16, 16], strides = [1, 1, 1]} : vector<4x16x20xf32> to vector<4x16x16xf32>
    %46 = vector.extract_strided_slice %45 {offsets = [0, 0, 0], sizes = [2, 16, 16], strides = [1, 1, 1]} : vector<4x16x16xf32> to vector<2x16x16xf32>
    %47 = vector.broadcast %6 : f32 to vector<2x16x16xf32>
    %48 = arith.mulf %46, %47 : vector<2x16x16xf32>
    %49 = arith.addf %41, %48 : vector<2x16x16xf32>
    %50 = vector.extract_strided_slice %45 {offsets = [2, 0, 0], sizes = [2, 16, 16], strides = [1, 1, 1]} : vector<4x16x16xf32> to vector<2x16x16xf32>
    %51 = vector.broadcast %21 : f32 to vector<2x16x16xf32>
    %52 = arith.mulf %50, %51 : vector<2x16x16xf32>
    %53 = arith.addf %44, %52 : vector<2x16x16xf32>
    %54 = vector.extract_strided_slice %32 {offsets = [0, 0, 0], sizes = [2, 16, 16], strides = [1, 1, 1]} : vector<4x16x16xf32> to vector<2x16x16xf32>
    %55 = vector.broadcast %9 : f32 to vector<2x16x16xf32>
    %56 = arith.mulf %54, %55 : vector<2x16x16xf32>
    %57 = arith.addf %49, %56 : vector<2x16x16xf32>
    %58 = vector.extract_strided_slice %32 {offsets = [2, 0, 0], sizes = [2, 16, 16], strides = [1, 1, 1]} : vector<4x16x16xf32> to vector<2x16x16xf32>
    %59 = vector.broadcast %24 : f32 to vector<2x16x16xf32>
    %60 = arith.mulf %58, %59 : vector<2x16x16xf32>
    %61 = arith.addf %53, %60 : vector<2x16x16xf32>
    %62 = vector.extract_strided_slice %37 {offsets = [0, 0, 3], sizes = [4, 16, 16], strides = [1, 1, 1]} : vector<4x16x20xf32> to vector<4x16x16xf32>
    %63 = vector.extract_strided_slice %62 {offsets = [0, 0, 0], sizes = [2, 16, 16], strides = [1, 1, 1]} : vector<4x16x16xf32> to vector<2x16x16xf32>
    %64 = vector.broadcast %12 : f32 to vector<2x16x16xf32>
    %65 = arith.mulf %63, %64 : vector<2x16x16xf32>
    %66 = arith.addf %57, %65 : vector<2x16x16xf32>
    %67 = vector.extract_strided_slice %62 {offsets = [2, 0, 0], sizes = [2, 16, 16], strides = [1, 1, 1]} : vector<4x16x16xf32> to vector<2x16x16xf32>
    %68 = vector.broadcast %27 : f32 to vector<2x16x16xf32>
    %69 = arith.mulf %67, %68 : vector<2x16x16xf32>
    %70 = arith.addf %61, %69 : vector<2x16x16xf32>
    %71 = vector.extract_strided_slice %37 {offsets = [0, 0, 4], sizes = [4, 16, 16], strides = [1, 1, 1]} : vector<4x16x20xf32> to vector<4x16x16xf32>
    %72 = vector.extract_strided_slice %71 {offsets = [0, 0, 0], sizes = [2, 16, 16], strides = [1, 1, 1]} : vector<4x16x16xf32> to vector<2x16x16xf32>
    %73 = vector.broadcast %15 : f32 to vector<2x16x16xf32>
    %74 = arith.mulf %72, %73 : vector<2x16x16xf32>
    %75 = arith.addf %66, %74 : vector<2x16x16xf32>
    %76 = vector.extract_strided_slice %71 {offsets = [2, 0, 0], sizes = [2, 16, 16], strides = [1, 1, 1]} : vector<4x16x16xf32> to vector<2x16x16xf32>
    %77 = vector.broadcast %30 : f32 to vector<2x16x16xf32>
    %78 = arith.mulf %76, %77 : vector<2x16x16xf32>
    %79 = arith.addf %70, %78 : vector<2x16x16xf32>
    %c0_3 = arith.constant 0 : index
    %c0_4 = arith.constant 0 : index
    %c0_5 = arith.constant 0 : index
    %c0_6 = arith.constant 0 : index
    %80 = vector.load %arg4[%c0_3, %c0_4, %c0_5, %c0_6] : memref<1x4x16x16xf32, #tpu.memory_space<vmem>>, vector<1x2x16x16xf32>
    %81 = vector.shape_cast %80 : vector<1x2x16x16xf32> to vector<2x16x16xf32>
    %82 = vector.shape_cast %75 : vector<2x16x16xf32> to vector<1x2x16x16xf32>
    tpu.vector_store %arg4[%c0_3, %c0_4, %c0_5, %c0_6], %82 {strides = array<i32>} : memref<1x4x16x16xf32, #tpu.memory_space<vmem>>, vector<1x2x16x16xf32>,
    %c0_7 = arith.constant 0 : index
    %c2 = arith.constant 2 : index
    %c0_8 = arith.constant 0 : index
    %c0_9 = arith.constant 0 : index
    %83 = vector.load %arg4[%c0_7, %c2, %c0_8, %c0_9] : memref<1x4x16x16xf32, #tpu.memory_space<vmem>>, vector<1x2x16x16xf32>
    %84 = vector.shape_cast %83 : vector<1x2x16x16xf32> to vector<2x16x16xf32>
    %85 = vector.shape_cast %79 : vector<2x16x16xf32> to vector<1x2x16x16xf32>
    tpu.vector_store %arg4[%c0_7, %c2, %c0_8, %c0_9], %85 {strides = array<i32>} : memref<1x4x16x16xf32, #tpu.memory_space<vmem>>, vector<1x2x16x16xf32>,
    return
  }
  func.func @transform_0(%arg0: i32, %arg1: i32, %arg2: memref<20xf32, #tpu.memory_space<smem>>) -> (i32, i32, i32, i32) {
    %c0_i32 = arith.constant 0 : i32
    %c0_i32_0 = arith.constant 0 : i32
    %c0_i32_1 = arith.constant 0 : i32
    return %arg0, %c0_i32, %arg1, %c0_i32_0 : i32, i32, i32, i32
  }
  func.func @transform_1(%arg0: i32, %arg1: i32, %arg2: memref<20xf32, #tpu.memory_space<smem>>) -> (i32, i32, i32, i32) {
    %c0_i32 = arith.constant 0 : i32
    %c0_i32_0 = arith.constant 0 : i32
    %c0_i32_1 = arith.constant 0 : i32
    return %arg0, %c0_i32, %arg1, %c0_i32_0 : i32, i32, i32, i32
  }
}

</mosaic_0001>

<bundles_post_ra>
// kernel: tpu_custom_call.1
= control target key start
LH: loop header
LB: loop body
LE: loop exit
PB: predicated region body
PF: predicated region fallthrough
CT: control target
= control target key end

     0   :  { %7 = vsyncpa [#allocation3], 0  ;;  %s1397_s0 = inlined_call_operand.hbm [shape: f32[2,4,16,16], index: 0, kind: input, shape index: {}]   ;;  %s1398_s1 = inlined_call_operand.hbm [shape: f32[4,1,10], index: 1, kind: input, shape index: {}]   ;;  %s1399_s2 = inlined_call_operand.hbm [shape: f32[2,4,16,16], index: 2, kind: output, shape index: {}]  }
   0x1   :  { %9 = vsyncpa [#allocation3 + $0x1], 0 }
   0x2   :  { %10 = vsyncpa [#allocation6], 0 }
   0x3   :  { %11 = vsyncpa [#allocation4], 0 }
   0x4   :  { %13 = vsyncpa [#allocation4 + $0x1], 0  ;;  %s1007_s9 = smov 0   ;;  %s1009_s10 = smov 0  }
   0x5   :  { %s1011_s11 = smov 0   ;;  %s1013_s12 = smov 0  }
   0x6 LB: > { %s1028_s13 = sadd.s32 4294967295, %s964_s12   ;;  %s718_s14 = sadd.s32 4294967294, %s964_s12   ;;  %s964_s12 = sphi %s1013_s12, %s1419_s12   ;;  %s960_s11 = sphi %s1011_s11, %s1418_s11   ;;  %s956_s10 = sphi %s1009_s10, %s1417_s10   ;;  %s952_s9 = sphi %s1007_s9, %s1416_s9  }
   0x7   : > { %p39_p0 = scmp.ne.s32.totalorder %s956_s10, %s952_s9  ;;  %p1400_p1 = scmp.eq.s32.totalorder %s1028_s13, 0 }
   0x8   : > { %p90_p3 = scmp.eq.s32.totalorder %s718_s14, 1  ;;  %p719_p5 = scmp.ge.s32.totalorder %s964_s12, 1 }
   0x9   : > { %p1037_p4 = por %p1400_p1, %p39_p0  ;;  %p97_p7 = scmp.lt.s32.totalorder %s964_s12, 3 }
   0xa   : > { %p1042_p6 = por %p90_p3, %p39_p0  ;;  %s966_s18 = smov [#allocation5]  }
   0xb   : > { %s1403_s15 = scalar_select %p1037_p4, 1, 0 }
   0xc   : > { %s1404_s16 = scalar_select %p1042_p6, 1, 0 }
   0xd   : > { %p1047_p8 = pnand %p719_p5, %p97_p7  ;;  %s109_s19 = sshll.u32 %s966_s18, 4  ;;  %s1051_s19 = int_to_ptr.vmem [resolvable:$true] %s109_s19 }
   0xe   : > { %s1063_s21 = sadd.s32 1, %s964_s12   ;;  %s26_s22 = sadd.s32 1, %s960_s11 }
   0xf   : > { %s1405_s17 = scalar_select %p1047_p8, 1, 0 }
  0x10   : > { %p749_p9 = pneg %p1047_p8  ;;  %s23_s23 = ssub.s32 %s964_s12, %s1063_s21 }
  0x11   : > { %s836_s26 = scalar_lea.hbm %s1398_s1, 64 }
  0x12   : > { %p1058_p11 = pnand %p749_p9, %p1400_p1  ;;  %p837_p12 = scmp.ne.s32.totalorder %s1398_s1, %s836_s26 }
  0x13   : > { %p843_p5 = scmp.lt.u32.totalorder %s836_s26, %s1398_s1 }
  0x14   : > { %p838_p13 = pneg %p1058_p11 }
  0x16   : > { %p839_p0 = pnand %p838_p13, %p837_p12 }
  0x18   : > { %p840_p3 = pneg %p839_p0 }
  0x1a   : > { %p845_p7 = pnand %p843_p5, %p840_p3 }
  0x1c   : > { %848 = shalt.err (!%p845_p7)
}
  0x1d   : > { %s849_s3 = scalar_lea.vmem %s1051_s19, 64  ;;  %p857_p2 = scmp.lt.s32.totalorder %s1051_s19, %s1051_s19 }
  0x1e   : > { %p850_p9 = scmp.ne.s32.totalorder %s1051_s19, %s849_s3  ;;  %p858_p6 = scmp.lt.s32.totalorder %s849_s3, %s849_s3 }
  0x20   : > { %p852_p10 = pnand %p850_p9, %p838_p13  ;;  %p859_p4 = por %p858_p6, %p857_p2 }
  0x22   : > { %p853_p1 = pneg %p852_p10 }
  0x24   : > { %p860_p8 = pnand %p859_p4, %p853_p1 }
  0x26   : > { %863 = shalt.err (!%p860_p8)
}
  0x27   : > { %s967_s4 = smov 16   ;;  %s968_s5 = smov 1  }
  0x28   : > { %752 = dma.hbm_to_vmem [thread:$0]  (!%p1058_p11), %s1398_s1, 64, %s1051_s19, [#allocation6], %s967_s4, %s967_s4, %s968_s5  }
  0x29   : > { %p24_p2 = scmp.eq.s32.totalorder %s23_s23, 0  ;;  %p33_p1 = scmp.ne.s32.totalorder %s960_s11, %s956_s10 }
  0x2a   : > { %p34_p4 = scmp.eq.s32.totalorder %s964_s12, 0  ;;  %p762_p6 = scmp.lt.s32.totalorder %s964_s12, 2 }
  0x2b   : > { %s1094_s8 = scalar_select %p24_p2, %s960_s11, %s26_s22  }
  0x2c   : > { %p35_p8 = por %p34_p4, %p33_p1  ;;  %p1407_p10 = scmp.eq.s32.totalorder %s1028_s13, 1 }
  0x2d   : > { %s123_s18 = sand.u32 1, %s960_s11   ;;  %s739_s24 = sshll.u32 %s964_s12, 10 }
  0x2e   : > { %p1098_p12 = por %p1407_p10, %p33_p1  ;;  %s722_s25 = sshll.u32 %s123_s18, 6 }
  0x2f   : > { %s1107_s27 = scalar_lea.hbm %s1397_s0, %s739_s24  ;;  %s127_s19 = scalar_lea.vmem [#allocation2], %s722_s25 }
  0x30   : > { %s134_s22 = sshll.u32 %s127_s19, 4  ;;  %p1109_p11 = pnand %p762_p6, %p35_p8  ;;  %s1113_s22 = int_to_ptr.vmem [resolvable:$true] %s134_s22 }
  0x31   : > { %s1115_s28 = scalar_lea.sflag [#allocation3], %s123_s18  ;;  %s864_s29 = scalar_lea.hbm %s1107_s27, 1024 }
  0x32   : > { %p865_p13 = scmp.ne.s32.totalorder %s1107_s27, %s864_s29  ;;  %p866_p0 = pneg %p1109_p11 }
  0x33   : > { %s869_s4 = scalar_lea.hbm %s1397_s0, 2048  ;;  %p870_p7 = scmp.lt.u32.totalorder %s1107_s27, %s1397_s0 }
  0x34   : > { %p867_p3 = pnand %p866_p0, %p865_p13  ;;  %p871_p9 = scmp.lt.u32.totalorder %s869_s4, %s864_s29 }
  0x35   : > { %p873_p1 = scmp.lt.u32.totalorder %s864_s29, %s1107_s27 }
  0x36   : > { %p868_p5 = pneg %p867_p3  ;;  %p872_p2 = por %p871_p9, %p870_p7 }
  0x38   : > { %p874_p4 = por %p873_p1, %p872_p2 }
  0x3a   : > { %p875_p6 = pnand %p874_p4, %p868_p5 }
  0x3c   : > { %878 = shalt.err (!%p875_p6)
}
  0x3d   : > { %s879_s7 = scalar_lea.vmem %s1113_s22, 1024  ;;  %s969_s18 = smov [#allocation2]  }
  0x3e   : > { %p880_p8 = scmp.ne.s32.totalorder %s1113_s22, %s879_s7  ;;  %s884_s24 = sshll.u32 %s969_s18, 4  ;;  %s885_s24 = int_to_ptr.vmem [resolvable:$false] %s884_s24 }
  0x3f   : > { %s886_s25 = scalar_lea.vmem %s885_s24, 2048  ;;  %p887_p3 = scmp.lt.s32.totalorder %s1113_s22, %s885_s24 }
  0x40   : > { %p882_p10 = pnand %p880_p8, %p866_p0  ;;  %p888_p7 = scmp.lt.s32.totalorder %s886_s25, %s879_s7 }
  0x42   : > { %p883_p13 = pneg %p882_p10  ;;  %p889_p9 = por %p888_p7, %p887_p3 }
  0x44   : > { %p890_p2 = pnand %p889_p9, %p883_p13 }
  0x46   : > { %893 = shalt.err (!%p890_p2)
}
  0x47   : > { %s970_s20 = smov 128   ;;  %s971_s26 = smov 8  }
  0x48   : > { %756 = dma.hbm_to_vmem [thread:$0]  (!%p1109_p11), %s1107_s27, 1024, %s1113_s22, %s1115_s28, %s970_s20, %s970_s20, %s971_s26  }
  0x49   : > { %p1410_p0 = scmp.ne.s32.totalorder %s1405_s17, 0 }
  0x4a   : > { %s1146_s19 = sand.u32 (!%p1410_p0), 1, %s956_s10   ;;  %p1411_p5 = scmp.ne.s32.totalorder (!%p1410_p0), %s1403_s15, 0 }
  0x4b   : > { %146 = sbr.rel (%p1410_p0) target bundleno = 596 (0x254), region = 28  ;;  %s726_s29 = sshll.u32 (!%p1410_p0), %s1146_s19, 6 }
  0x4c   : > { %s149_s30 = scalar_lea.sflag (!%p1410_p0), [#allocation3], %s1146_s19  ;;  %s152_s3 = scalar_lea.vmem (!%p1410_p0), [#allocation2], %s726_s29 }
  0x52   : > { %939 = dma.done.wait (%p1411_p5), %s149_s30, 1024  }
  0x53   : > { %941 = vsyncadd (%p1411_p5), %s149_s30, 4294966272  ;;  %p1412_p11 = scmp.eq.s32.totalorder %s1028_s13, 0 }
  0x55   : > { %943 = dma.done.wait (%p1412_p11), [#allocation6], 64   ;;  %p1413_p1 = pmov %p1412_p11 }
  0x56   : > { %vm185_vm0 = vcmask 130048   ;;  %v1160_v0 = vld [vmem:[%s152_s3 + $0x10] sm:$0xff]  ;;  %v1162_v1 = vld [vmem:[%s152_s3] sm:$0xff]  ;;  %v1164_v2 = vld [vmem:[%s152_s3 + $0x18] sm:$0xff]  ;;  %s972_s15 = smov 126   ;;  %s973_s17 = smov 2  }
  0x57   : > { %945 = vsyncadd (%p1413_p1), [#allocation6], 4294967232  ;;  %v192_v3 = vsel %vm185_vm0, %v1160_v0, 0.0  ;;  %v186_v4 = vsel %vm185_vm0, %v1162_v1, 0.0  ;;  %v1170_v5 = vld [vmem:[%s152_s3 + $0x8] sm:$0xff]  ;;  %v195_v6 = vsel %vm185_vm0, %v1164_v2, 0.0 }
  0x58   : > { %193 = vadd.xlane.f32.xlu1 %v192_v3  ;;  %187 = vadd.xlane.f32.xlu0 %v186_v4  ;;  %v189_v7 = vsel %vm185_vm0, %v1170_v5, 0.0  ;;  %v1176_v8 = vld [vmem:[%s152_s3 + $0x28] sm:$0xff]  ;;  %v1178_v9 = vld [vmem:[%s152_s3 + $0x20] sm:$0xff]  ;;  %v1184_v12 = vld [vmem:[%s152_s3 + $0x38] sm:$0xff]  ;;  %s974_s27 = smov 4   ;;  %v975_v16 = vmov 6  }
  0x59   : > { %v201_v10 = vsel %vm185_vm0, %v1176_v8, 0.0  ;;  %v198_v11 = vsel %vm185_vm0, %v1178_v9, 0.0  ;;  %v1186_v13 = vld [vmem:[%s152_s3 + $0x30] sm:$0xff]  ;;  %v207_v14 = vsel %vm185_vm0, %v1184_v12, 0.0  ;;  %822 = vset.pattern.permute.xlu0 %v975_v16  ;;  %s976_s22 = smov 6   ;;  %v977_v17 = vmov 1  }
  0x5a   : > { %v204_v15 = vsel %vm185_vm0, %v1186_v13, 0.0  ;;  %821 = vset.pattern.permute.xlu1 %v977_v17  ;;  %v243_v52 = vld [vmem:[#allocation5 + $0x1] sm:$0x1]  ;;  %v242_v53 = vld [vmem:[#allocation5] sm:$0x1]  ;;  %v400_v16 = vlaneseq  ;;  %vm363_vm1 = vcmask 7168  }
  0x5b   : > { %v244_v56 = vld [vmem:[#allocation5 + $0x2] sm:$0x1]  ;;  %v245_v63 = vld [vmem:[#allocation5 + $0x3] sm:$0x1]  ;;  %vm372_vm2 = vcmask 15360   ;;  %vm381_vm3 = vcmask 146432  }
  0x5c   : > { %196 = vadd.xlane.f32.xlu1 %v195_v6  ;;  %190 = vadd.xlane.f32.xlu0 %v189_v7  ;;  %v401_v17 = vshrl.u32 %v400_v16, 7  ;;  %vm390_vm4 = vcmask 154624   ;;  %s986_s23 = smov 127   ;;  %s987_s28 = smov 125  }
  0x5d   : > { %s988_s4 = smov 124   ;;  %s1324_s5 = scalar_lea.vmem [#allocation7], %s726_s29 }
  0x5e   : > { %s740_s6 = sshll.u32 %s1028_s13, 10  ;;  %s635_s7 = sshll.u32 %s1324_s5, 4  ;;  %s1349_s7 = int_to_ptr.vmem [resolvable:$true] %s635_s7 }
  0x5f   : > { %s1347_s25 = scalar_lea.hbm %s1399_s2, %s740_s6  ;;  %s622_s13 = scalar_lea.sflag [#allocation4], %s1146_s19 }
  0x60   : > { %202 = vadd.xlane.f32.xlu1 %v201_v10  ;;  %199 = vadd.xlane.f32.xlu0 %v198_v11  ;;  %s894_s20 = scalar_lea.vmem %s1349_s7, 1024  ;;  %s989_s26 = smov [#allocation7]  }
  0x61   : > { %p895_p4 = scmp.ne.s32.totalorder %s1349_s7, %s894_s20  ;;  %s898_s29 = sshll.u32 %s989_s26, 4  ;;  %s899_s29 = int_to_ptr.vmem [resolvable:$false] %s898_s29 }
  0x62   : > { %s900_s30 = scalar_lea.vmem %s899_s29, 2048  ;;  %p901_p10 = scmp.lt.s32.totalorder %s1349_s7, %s899_s29 }
  0x63   : > { %p896_p6 = pnand %p895_p4, %p1098_p12  ;;  %p902_p13 = scmp.lt.s32.totalorder %s900_s30, %s894_s20 }
  0x64   : > { %208 = vadd.xlane.f32.xlu1 %v207_v14  ;;  %205 = vadd.xlane.f32.xlu0 %v204_v15 }
  0x65   : > { %p897_p8 = pneg %p896_p6  ;;  %p903_p3 = por %p902_p13, %p901_p10 }
  0x67   : > { %p904_p7 = pnand %p903_p3, %p897_p8 }
  0x75   : > { %269 = vrot.lane.b32.xlu1 %v1170_v5, %s972_s15 }
  0x79   : > { %271 = vrot.lane.b32.xlu1 %v1160_v0, %s972_s15 }
  0x7a   : > { %267 = vrot.lane.b32.xlu0 %v1162_v1, %s972_s15 }
  0x7d   : > { %273 = vrot.lane.b32.xlu1 %v1164_v2, %s972_s15 }
  0x7e   : > { %275 = vrot.lane.b32.xlu0 %v1178_v9, %s972_s15 }
  0x81   : > { %277 = vrot.lane.b32.xlu1 %v1176_v8, %s972_s15 }
  0x82   : > { %279 = vrot.lane.b32.xlu0 %v1186_v13, %s972_s15 }
  0x85   : > { %281 = vrot.lane.b32.xlu1 %v1184_v12, %s972_s15 }
  0x86   : > { %291 = vrot.lane.b32.xlu0 %v1162_v1, %s973_s17 }
  0x89   : > { %293 = vrot.lane.b32.xlu1 %v1170_v5, %s973_s17 }
  0x8a   : > { %297 = vrot.lane.b32.xlu0 %v1164_v2, %s973_s17 }
  0x8d   : > { %295 = vrot.lane.b32.xlu1 %v1160_v0, %s973_s17 }
  0x8e   : > { %301 = vrot.lane.b32.xlu0 %v1176_v8, %s973_s17 }
  0x91   : > { %299 = vrot.lane.b32.xlu1 %v1178_v9, %s973_s17 }
  0x92   : > { %305 = vrot.lane.b32.xlu0 %v1184_v12, %s973_s17 }
  0x95   : > { %303 = vrot.lane.b32.xlu1 %v1186_v13, %s973_s17 }
  0x96   : > { %319 = vrot.lane.b32.xlu0 %v1160_v0, %s974_s27 }
  0x99   : > { %315 = vrot.lane.b32.xlu1 %v1162_v1, %s974_s27 }
  0x9a   : > { %323 = vrot.lane.b32.xlu0 %v1178_v9, %s974_s27 }
  0x9d   : > { %317 = vrot.lane.b32.xlu1 %v1170_v5, %s974_s27 }
  0x9e   : > { %327 = vrot.lane.b32.xlu0 %v1186_v13, %s974_s27 }
  0xa1   : > { %321 = vrot.lane.b32.xlu1 %v1164_v2, %s974_s27 }
  0xa2   : > { %339 = vrot.lane.b32.xlu0 %v1162_v1, %s976_s22 }
  0xa5   : > { %325 = vrot.lane.b32.xlu1 %v1176_v8, %s974_s27 }
  0xa6   : > { %343 = vrot.lane.b32.xlu0 %v1160_v0, %s976_s22 }
  0xa9   : > { %329 = vrot.lane.b32.xlu1 %v1184_v12, %s974_s27 }
  0xaa   : > { %347 = vrot.lane.b32.xlu0 %v1178_v9, %s976_s22 }
  0xad   : > { %341 = vrot.lane.b32.xlu1 %v1170_v5, %s976_s22 }
  0xae   : > { %351 = vrot.lane.b32.xlu0 %v1186_v13, %s976_s22 }
  0xb1   : > { %345 = vrot.lane.b32.xlu1 %v1164_v2, %s976_s22 }
  0xb5   : > { %349 = vrot.lane.b32.xlu1 %v1176_v8, %s976_s22 }
  0xb9   : > { %353 = vrot.lane.b32.xlu1 %v1184_v12, %s976_s22 }
  0xe5   : > { %v194_v18 = vpop.xlane.xlu1 %193  ;;  %v188_v19 = vpop.xlane.xlu0 %187 }
  0xe9   : > { %v197_v20 = vpop.xlane.xlu1 %196  ;;  %v191_v21 = vpop.xlane.xlu0 %190 }
  0xea   : > { %v217_v22 = vadd.f32 %v197_v20, %v194_v18  ;;  %v210_v23 = vadd.f32 %v191_v21, %v188_v19  ;;  %v402_v18 = vsub.s32 0, %v401_v17  ;;  %v978_v21 = vmov 8  }
  0xec   : > { %v218_v24 = vrot.slane %v217_v22, 4  ;;  %v211_v25 = vrot.slane %v210_v23, 4 }
  0xed   : > { %v203_v26 = vpop.xlane.xlu1 %202  ;;  %v200_v27 = vpop.xlane.xlu0 %199 }
  0xee   : > { %v219_v28 = vadd.f32 %v218_v24, %v217_v22  ;;  %v212_v29 = vadd.f32 %v211_v25, %v210_v23  ;;  %v224_v30 = vadd.f32 %v203_v26, %v200_v27  ;;  %v979_v22 = vmov 3  }
  0xef   : > { %v980_v23 = vmov 4   ;;  %v981_v24 = vmov 9   ;;  %v982_v25 = vmov 5   ;;  %v983_v26 = vmov 0  }
  0xf0   : > { %v220_v31 = vrot.slane %v219_v28, 2  ;;  %v213_v32 = vrot.slane %v212_v29, 2  ;;  %v225_v33 = vrot.slane %v224_v30, 4  ;;  %v984_v27 = vmov 2  }
  0xf1   : > { %v209_v34 = vpop.xlane.xlu1 %208  ;;  %v206_v35 = vpop.xlane.xlu0 %205 }
  0xf2   : > { %v221_v36 = vadd.f32 %v220_v31, %v219_v28  ;;  %v214_v37 = vadd.f32 %v213_v32, %v212_v29  ;;  %v226_v38 = vadd.f32 %v225_v33, %v224_v30  ;;  %v231_v39 = vadd.f32 %v209_v34, %v206_v35 }
  0xf3   : > { %v985_v29 = vmov 7  }
  0xf4   : > { %v222_v40 = vrot.slane %v221_v36, 1  ;;  %v215_v41 = vrot.slane %v214_v37, 1  ;;  %v227_v42 = vrot.slane %v226_v38, 2  ;;  %v232_v43 = vrot.slane %v231_v39, 4 }
  0xf5   : > { %v270_v28 = vpop.permute.xlu1 %269  ;;  %v268_v34 = vpop.permute.xlu0 %267 }
  0xf6   : > { %v223_v44 = vadd.f32 %v222_v40, %v221_v36  ;;  %v216_v45 = vadd.f32 %v215_v41, %v214_v37  ;;  %v228_v46 = vadd.f32 %v227_v42, %v226_v38  ;;  %v233_v47 = vadd.f32 %v232_v43, %v231_v39 }
  0xf8   : > { %v239_v48 = vmul.f32 0.00390625, %v223_v44  ;;  %v238_v49 = vmul.f32 0.00390625, %v216_v45  ;;  %v229_v50 = vrot.slane %v228_v46, 1  ;;  %v234_v51 = vrot.slane %v233_v47, 2 }
  0xf9   : > { %v272_v30 = vpop.permute.xlu1 %271  ;;  %v276_v36 = vpop.permute.xlu0 %275 }
  0xfa   : > { %v230_v54 = vadd.f32 %v229_v50, %v228_v46  ;;  %v235_v55 = vadd.f32 %v234_v51, %v233_v47  ;;  %v247_v57 = vmul.f32 %v243_v52, %v239_v48  ;;  %v246_v58 = vmul.f32 %v242_v53, %v238_v49 }
  0xfc   : > { %v240_v59 = vmul.f32 0.00390625, %v230_v54  ;;  %v236_v60 = vrot.slane %v235_v55, 1  ;;  %v250_v3 = vadd.f32 %v247_v57, %v246_v58  ;;  %v365_v57 = vsel %vm363_vm1, %v270_v28, %v1170_v5 }
  0xfd   : > { %v274_v31 = vpop.permute.xlu1 %273  ;;  %v280_v38 = vpop.permute.xlu0 %279  ;;  %v364_v58 = vsel %vm363_vm1, %v268_v34, %v1162_v1 }
  0xfe   : > { %v248_v61 = vmul.f32 %v244_v56, %v240_v59  ;;  %v237_v62 = vadd.f32 %v236_v60, %v235_v55 }
 0x100   : > { %v241_v4 = vmul.f32 0.00390625, %v237_v62  ;;  %v251_v6 = vadd.f32 %v250_v3, %v248_v61  ;;  %v366_v62 = vsel %vm363_vm1, %v272_v30, %v1160_v0 }
 0x101   : > { %v278_v32 = vpop.permute.xlu1 %277  ;;  %v292_v40 = vpop.permute.xlu0 %291 }
 0x102   : > { %v249_v7 = vmul.f32 %v245_v63, %v241_v4  ;;  %v373_v61 = vsel %vm372_vm2, %v364_v58, %v292_v40  ;;  %v367_v63 = vsel %vm363_vm1, %v274_v31, %v1164_v2 }
 0x104   : > { %v252_v10 = vadd.f32 %v251_v6, %v249_v7 }
 0x105   : > { %v282_v33 = vpop.permute.xlu1 %281  ;;  %v298_v42 = vpop.permute.xlu0 %297 }
 0x106   : > { %v729_v11 = vmul.f32 -1.442695, %v252_v10 }
 0x108   : > { %832 = vpow2.f32 %v729_v11  ;;  %v376_v11 = vsel %vm372_vm2, %v367_v63, %v298_v42 }
 0x109   : > { %v294_v35 = vpop.permute.xlu1 %293  ;;  %v302_v44 = vpop.permute.xlu0 %301 }
 0x10a   : > { %v374_v60 = vsel %vm372_vm2, %v365_v57, %v294_v35 }
 0x10d   : > { %v296_v37 = vpop.permute.xlu1 %295  ;;  %v306_v46 = vpop.permute.xlu0 %305 }
 0x10e   : > { %v375_v10 = vsel %vm372_vm2, %v366_v62, %v296_v37 }
 0x111   : > { %v300_v39 = vpop.permute.xlu1 %299  ;;  %v320_v48 = vpop.permute.xlu0 %319 }
 0x112   : > { %v833_v14 = vpop.eup %832 }
 0x113   : > { %v256_v15 = vadd.f32 1.0, %v833_v14  ;;  %v369_v14 = vsel %vm363_vm1, %v278_v32, %v1176_v8 }
 0x115   : > { %834 = vrcp.f32 %v256_v15  ;;  %v304_v41 = vpop.permute.xlu1 %303  ;;  %v324_v50 = vpop.permute.xlu0 %323  ;;  %v368_v15 = vsel %vm363_vm1, %v276_v36, %v1178_v9 }
 0x119   : > { %v316_v43 = vpop.permute.xlu1 %315  ;;  %v328_v52 = vpop.permute.xlu0 %327 }
 0x11a   : > { %v382_v6 = vsel %vm381_vm3, %v373_v61, %v316_v43 }
 0x11d   : > { %v318_v45 = vpop.permute.xlu1 %317  ;;  %v340_v55 = vpop.permute.xlu0 %339 }
 0x11e   : > { %v383_v7 = vsel %vm381_vm3, %v374_v60, %v318_v45  ;;  %v1246_v17 = vsel %vm390_vm4, %v382_v6, %v340_v55 }
 0x11f   : > { %v835_v19 = vpop.eup %834 }
 0x120   : > { %v403_v20 = vrot.slane %v835_v19, %v402_v18 }
 0x121   : > { %v322_v47 = vpop.permute.xlu1 %321  ;;  %v344_v59 = vpop.permute.xlu0 %343 }
 0x122   : > { %449 = vperm.xlu0 %822, %v403_v20   ;;  %421 = vperm.xlu1 %821, %v403_v20   ;;  %v385_v19 = vsel %vm381_vm3, %v376_v11, %v322_v47 }
 0x125   : > { %v326_v49 = vpop.permute.xlu1 %325  ;;  %v348_v4 = vpop.permute.xlu0 %347 }
 0x126   : > { %824 = vset.pattern.permute.xlu0 %v978_v21  ;;  %823 = vset.pattern.permute.xlu1 %v979_v22 }
 0x127   : > { %529 = vperm.xlu0 %824, %v403_v20   ;;  %501 = vperm.xlu1 %823, %v403_v20  }
 0x129   : > { %v330_v51 = vpop.permute.xlu1 %329 }
 0x12b   : > { %825 = vset.pattern.permute.xlu0 %v980_v23  ;;  %826 = vset.pattern.permute.xlu1 %v981_v24  ;;  %v377_v23 = vsel %vm372_vm2, %v368_v15, %v300_v39 }
 0x12c   : > { %557 = vperm.xlu0 %825, %v403_v20   ;;  %585 = vperm.xlu1 %826, %v403_v20   ;;  %v386_v31 = vsel %vm381_vm3, %v377_v23, %v324_v50 }
 0x12d   : > { %v342_v53 = vpop.permute.xlu1 %341 }
 0x12e   : > { %v1243_v16 = vsel %vm390_vm4, %v383_v7, %v342_v53 }
 0x130   : > { %828 = vset.pattern.permute.xlu0 %v982_v25  ;;  %827 = vset.pattern.permute.xlu1 %v983_v26  ;;  %v352_v25 = vpop.permute.xlu0 %351  ;;  %v371_v26 = vsel %vm363_vm1, %v282_v33, %v1184_v12 }
 0x131   : > { %413 = vperm.xlu0 %828, %v403_v20   ;;  %405 = vperm.xlu1 %827, %v403_v20   ;;  %v346_v54 = vpop.permute.xlu1 %345  ;;  %v380_v35 = vsel %vm372_vm2, %v371_v26, %v306_v46 }
 0x132   : > { %v389_v39 = vsel %vm381_vm3, %v380_v35, %v330_v51 }
 0x135   : > { %829 = vset.pattern.permute.xlu1 %v984_v27  ;;  %831 = vset.pattern.permute.xlu0 %v981_v24  ;;  %v350_v56 = vpop.permute.xlu1 %349  ;;  %v378_v24 = vsel %vm372_vm2, %v369_v14, %v302_v44  ;;  %v370_v27 = vsel %vm363_vm1, %v280_v38, %v1186_v13  ;;  %v1274_v38 = vsel %vm390_vm4, %v386_v31, %v348_v4 }
 0x136   : > { %477 = vperm.xlu1 %829, %v403_v20   ;;  %v387_v30 = vsel %vm381_vm3, %v378_v24, %v326_v49  ;;  %v379_v34 = vsel %vm372_vm2, %v370_v27, %v304_v41 }
 0x137   : > { %v1271_v37 = vsel %vm390_vm4, %v387_v30, %v350_v56  ;;  %v388_v40 = vsel %vm381_vm3, %v379_v34, %v328_v52 }
 0x138   : > { %v1284_v44 = vsel %vm390_vm4, %v388_v40, %v352_v25 }
 0x139   : > { %v354_v3 = vpop.permute.xlu1 %353 }
 0x13a   : > { %830 = vset.pattern.permute.xlu1 %v985_v29  ;;  %v1262_v29 = vsel %vm390_vm4, %v385_v19, %v346_v54  ;;  %v1281_v41 = vsel %vm390_vm4, %v389_v39, %v354_v3 }
 0x13b   : > { %489 = vperm.xlu1 %830, %v403_v20   ;;  %v384_v20 = vsel %vm381_vm3, %v375_v10, %v320_v48 }
 0x13c   : > { %v1259_v28 = vsel %vm390_vm4, %v384_v20, %v344_v59 }
 0x1a1   : > { %v422_v18 = vpop.permute.xlu1 %421  ;;  %v450_v36 = vpop.permute.xlu0 %449 }
 0x1a2   : > { %v425_v21 = vmul.f32 %v422_v18, %v1243_v16  ;;  %v424_v22 = vmul.f32 %v422_v18, %v1246_v17  ;;  %v427_v32 = vmul.f32 %v422_v18, %v1262_v29  ;;  %v426_v33 = vmul.f32 %v422_v18, %v1259_v28 }
 0x1a3   : > { %v453_v42 = vmul.f32 %v450_v36, %v1271_v37  ;;  %v452_v43 = vmul.f32 %v450_v36, %v1274_v38  ;;  %v455_v45 = vmul.f32 %v450_v36, %v1281_v41  ;;  %v454_v46 = vmul.f32 %v450_v36, %v1284_v44 }
 0x1a4   : > { %434 = vrot.lane.b32.xlu1 %v425_v21, %s986_s23  ;;  %432 = vrot.lane.b32.xlu0 %v424_v22, %s986_s23 }
 0x1a6   : > { %v502_v47 = vpop.permute.xlu1 %501  ;;  %v530_v52 = vpop.permute.xlu0 %529 }
 0x1a7   : > { %v505_v48 = vmul.f32 %v502_v47, %v1243_v16  ;;  %v504_v49 = vmul.f32 %v502_v47, %v1246_v17  ;;  %v507_v50 = vmul.f32 %v502_v47, %v1262_v29  ;;  %v506_v51 = vmul.f32 %v502_v47, %v1259_v28 }
 0x1a8   : > { %438 = vrot.lane.b32.xlu1 %v427_v32, %s986_s23  ;;  %436 = vrot.lane.b32.xlu0 %v426_v33, %s986_s23  ;;  %v533_v53 = vmul.f32 %v530_v52, %v1271_v37  ;;  %v532_v54 = vmul.f32 %v530_v52, %v1274_v38  ;;  %v535_v55 = vmul.f32 %v530_v52, %v1281_v41 }
 0x1a9   : > { %v534_v56 = vmul.f32 %v530_v52, %v1284_v44 }
 0x1ab   : > { %v558_v57 = vpop.permute.xlu0 %557  ;;  %v586_v62 = vpop.permute.xlu1 %585 }
 0x1ac   : > { %462 = vrot.lane.b32.xlu1 %v453_v42, %s986_s23  ;;  %460 = vrot.lane.b32.xlu0 %v452_v43, %s986_s23  ;;  %v561_v58 = vmul.f32 %v558_v57, %v1243_v16  ;;  %v560_v59 = vmul.f32 %v558_v57, %v1246_v17  ;;  %v563_v60 = vmul.f32 %v558_v57, %v1262_v29 }
 0x1ad   : > { %v562_v61 = vmul.f32 %v558_v57, %v1259_v28  ;;  %v589_v63 = vmul.f32 %v586_v62, %v1271_v37  ;;  %v588_v3 = vmul.f32 %v586_v62, %v1274_v38  ;;  %v591_v4 = vmul.f32 %v586_v62, %v1281_v41 }
 0x1ae   : > { %v590_v6 = vmul.f32 %v586_v62, %v1284_v44 }
 0x1b0   : > { %466 = vrot.lane.b32.xlu1 %v455_v45, %s986_s23  ;;  %464 = vrot.lane.b32.xlu0 %v454_v46, %s986_s23  ;;  %v406_v7 = vpop.permute.xlu1 %405  ;;  %v414_v11 = vpop.permute.xlu0 %413 }
 0x1b1   : > { %v409_v31 = vmul.f32 %v406_v7, %v1243_v16  ;;  %v408_v32 = vmul.f32 %v406_v7, %v1246_v17  ;;  %v411_v39 = vmul.f32 %v406_v7, %v1262_v29  ;;  %v410_v40 = vmul.f32 %v406_v7, %v1259_v28 }
 0x1b2   : > { %v417_v17 = vmul.f32 %v414_v11, %v1271_v37 }
 0x1b4   : > { %514 = vrot.lane.b32.xlu1 %v505_v48, %s987_s28  ;;  %512 = vrot.lane.b32.xlu0 %v504_v49, %s987_s28 }
 0x1b5   : > { %v478_v10 = vpop.permute.xlu1 %477 }
 0x1b6   : > { %v481_v42 = vmul.f32 %v478_v10, %v1170_v5  ;;  %v480_v43 = vmul.f32 %v478_v10, %v1162_v1  ;;  %v483_v29 = vmul.f32 %v478_v10, %v1164_v2  ;;  %v482_v28 = vmul.f32 %v478_v10, %v1160_v0 }
 0x1b7   : > { %v418_v2 = vmul.f32 %v414_v11, %v1284_v44 }
 0x1b8   : > { %518 = vrot.lane.b32.xlu1 %v507_v50, %s987_s28  ;;  %516 = vrot.lane.b32.xlu0 %v506_v51, %s987_s28  ;;  %v416_v50 = vmul.f32 %v414_v11, %v1274_v38 }
 0x1ba   : > { %v1304_v14 = vpop.permute.xlu1 %489 }
 0x1bb   : > { %v493_v37 = vmul.f32 %v1304_v14, %v1176_v8  ;;  %v492_v38 = vmul.f32 %v1304_v14, %v1178_v9  ;;  %v495_v7 = vmul.f32 %v1304_v14, %v1184_v12  ;;  %v494_v10 = vmul.f32 %v1304_v14, %v1186_v13 }
 0x1bc   : > { %542 = vrot.lane.b32.xlu1 %v533_v53, %s987_s28  ;;  %540 = vrot.lane.b32.xlu0 %v532_v54, %s987_s28 }
 0x1c0   : > { %546 = vrot.lane.b32.xlu1 %v535_v55, %s987_s28  ;;  %544 = vrot.lane.b32.xlu0 %v534_v56, %s987_s28 }
 0x1c4   : > { %570 = vrot.lane.b32.xlu1 %v561_v58, %s988_s4  ;;  %568 = vrot.lane.b32.xlu0 %v560_v59, %s988_s4  ;;  %v419_v59 = vmul.f32 %v414_v11, %v1281_v41 }
 0x1c8   : > { %574 = vrot.lane.b32.xlu1 %v563_v60, %s988_s4  ;;  %572 = vrot.lane.b32.xlu0 %v562_v61, %s988_s4 }
 0x1cc   : > { %598 = vrot.lane.b32.xlu1 %v589_v63, %s988_s4  ;;  %596 = vrot.lane.b32.xlu0 %v588_v3, %s988_s4 }
 0x1d0   : > { %602 = vrot.lane.b32.xlu1 %v591_v4, %s988_s4  ;;  %600 = vrot.lane.b32.xlu0 %v590_v6, %s988_s4 }
 0x216   : > { %v435_v15 = vpop.permute.xlu1 %434  ;;  %v433_v18 = vpop.permute.xlu0 %432 }
 0x217   : > { %v445_v35 = vadd.f32 %v435_v15, %v409_v31  ;;  %v444_v36 = vadd.f32 %v433_v18, %v408_v32 }
 0x219   : > { %v485_v49 = vadd.f32 %v481_v42, %v445_v35  ;;  %v484_v16 = vadd.f32 %v480_v43, %v444_v36 }
 0x21a   : > { %v439_v19 = vpop.permute.xlu1 %438  ;;  %v437_v20 = vpop.permute.xlu0 %436 }
 0x21b   : > { %v447_v47 = vadd.f32 %v439_v19, %v411_v39  ;;  %v446_v48 = vadd.f32 %v437_v20, %v410_v40 }
 0x21d   : > { %v487_v55 = vadd.f32 %v483_v29, %v447_v47  ;;  %v486_v56 = vadd.f32 %v482_v28, %v446_v48 }
 0x21e   : > { %v463_v21 = vpop.permute.xlu1 %462  ;;  %v461_v22 = vpop.permute.xlu0 %460 }
 0x21f   : > { %v473_v5 = vadd.f32 %v463_v21, %v417_v17  ;;  %v472_v53 = vadd.f32 %v461_v22, %v416_v50 }
 0x221   : > { %v497_v8 = vadd.f32 %v493_v37, %v473_v5  ;;  %v496_v61 = vadd.f32 %v492_v38, %v472_v53 }
 0x222   : > { %v467_v23 = vpop.permute.xlu1 %466  ;;  %v465_v24 = vpop.permute.xlu0 %464 }
 0x223   : > { %v475_v41 = vadd.f32 %v467_v23, %v419_v59  ;;  %v474_v44 = vadd.f32 %v465_v24, %v418_v2 }
 0x225   : > { %v499_v18 = vadd.f32 %v495_v7, %v475_v41  ;;  %v498_v19 = vadd.f32 %v494_v10, %v474_v44 }
 0x226   : > { %v515_v25 = vpop.permute.xlu1 %514  ;;  %v513_v26 = vpop.permute.xlu0 %512 }
 0x227   : > { %v525_v51 = vadd.f32 %v515_v25, %v485_v49  ;;  %v524_v52 = vadd.f32 %v513_v26, %v484_v16 }
 0x22a   : > { %v519_v27 = vpop.permute.xlu1 %518  ;;  %v517_v30 = vpop.permute.xlu0 %516 }
 0x22b   : > { %v527_v60 = vadd.f32 %v519_v27, %v487_v55  ;;  %v526_v0 = vadd.f32 %v517_v30, %v486_v56 }
 0x22e   : > { %v543_v33 = vpop.permute.xlu1 %542  ;;  %v541_v34 = vpop.permute.xlu0 %540 }
 0x22f   : > { %v553_v4 = vadd.f32 %v543_v33, %v497_v8  ;;  %v552_v6 = vadd.f32 %v541_v34, %v496_v61 }
 0x232   : > { %v547_v45 = vpop.permute.xlu1 %546  ;;  %v545_v46 = vpop.permute.xlu0 %544 }
 0x233   : > { %v555_v12 = vadd.f32 %v547_v45, %v499_v18  ;;  %v554_v22 = vadd.f32 %v545_v46, %v498_v19 }
 0x236   : > { %v571_v1 = vpop.permute.xlu1 %570  ;;  %v569_v54 = vpop.permute.xlu0 %568 }
 0x237   : > { %v581_v57 = vadd.f32 %v571_v1, %v525_v51  ;;  %v580_v58 = vadd.f32 %v569_v54, %v524_v52 }
 0x239   : > { %613 = vst.msk [vmem:[%s1324_s5 + $0x8] sm:$0xff] %vm185_vm0, %v581_v57  ;;  %612 = vst.msk [vmem:[%s1324_s5] sm:$0xff] %vm185_vm0, %v580_v58 }
 0x23a   : > { %v575_v9 = vpop.permute.xlu1 %574  ;;  %v573_v62 = vpop.permute.xlu0 %572 }
 0x23b   : > { %v583_v63 = vadd.f32 %v575_v9, %v527_v60  ;;  %v582_v3 = vadd.f32 %v573_v62, %v526_v0 }
 0x23d   : > { %615 = vst.msk [vmem:[%s1324_s5 + $0x18] sm:$0xff] %vm185_vm0, %v583_v63  ;;  %614 = vst.msk [vmem:[%s1324_s5 + $0x10] sm:$0xff] %vm185_vm0, %v582_v3 }
 0x23e   : > { %v599_v11 = vpop.permute.xlu1 %598  ;;  %v597_v15 = vpop.permute.xlu0 %596 }
 0x23f   : > { %v609_v20 = vadd.f32 %v599_v11, %v553_v4  ;;  %v608_v21 = vadd.f32 %v597_v15, %v552_v6 }
 0x241   : > { %731 = vst.msk [vmem:[%s1324_s5 + $0x28] sm:$0xff] %vm185_vm0, %v609_v20  ;;  %730 = vst.msk [vmem:[%s1324_s5 + $0x20] sm:$0xff] %vm185_vm0, %v608_v21 }
 0x242   : > { %v603_v13 = vpop.permute.xlu1 %602  ;;  %v601_v14 = vpop.permute.xlu0 %600 }
 0x243   : > { %v611_v23 = vadd.f32 %v603_v13, %v555_v12  ;;  %v610_v24 = vadd.f32 %v601_v14, %v554_v22 }
 0x245   : > { %733 = vst.msk [vmem:[%s1324_s5 + $0x38] sm:$0xff] %vm185_vm0, %v611_v23  ;;  %732 = vst.msk [vmem:[%s1324_s5 + $0x30] sm:$0xff] %vm185_vm0, %v610_v24 }
 0x246   : > { %907 = shalt.err (!%p904_p7)
}
 0x247   : > { %s908_s3 = scalar_lea.hbm %s1347_s25, 1024  ;;  %s912_s27 = scalar_lea.hbm %s1399_s2, 2048 }
 0x248   : > { %p909_p9 = scmp.ne.s32.totalorder %s1347_s25, %s908_s3  ;;  %p913_p5 = scmp.lt.u32.totalorder %s1347_s25, %s1399_s2 }
 0x249   : > { %p914_p11 = scmp.lt.u32.totalorder %s912_s27, %s908_s3  ;;  %p916_p4 = scmp.lt.u32.totalorder %s908_s3, %s1347_s25 }
 0x24a   : > { %p910_p2 = pnand %p909_p9, %p1098_p12 }
 0x24b   : > { %p915_p1 = por %p914_p11, %p913_p5 }
 0x24c   : > { %p911_p0 = pneg %p910_p2 }
 0x24d   : > { %p917_p6 = por %p916_p4, %p915_p1 }
 0x24f   : > { %p918_p8 = pnand %p917_p6, %p911_p0 }
 0x251   : > { %921 = shalt.err (!%p918_p8)
}
 0x252   : > { %s990_s28 = smov 128   ;;  %s991_s4 = smov 8  }
 0x253   : > { %747 = dma.vmem_to_hbm [thread:$0]  (%p1098_p12), %s1349_s7, 1024, %s1347_s25, %s622_s13, %s990_s28, %s990_s28, %s991_s4  }
 0x254 PF: > { %s650_s5 = sand.u32 1, %s952_s9   ;;  %p1414_p10 = scmp.ne.s32.totalorder %s1404_s16, 0 }
 0x255   : > { %p1415_p13 = scmp.ge.s32.totalorder %s964_s12, 2  ;;  %s651_s6 = scalar_lea.sflag [#allocation4], %s650_s5 }
 0x257   : > { %p758_p3 = pnand %p1415_p13, %p1414_p10 }
 0x259   : > { %947 = dma.done.wait (!%p758_p3), %s651_s6, 1024  }
 0x25a   : > { %949 = vsyncadd (!%p758_p3), %s651_s6, 4294966272  ;;  %p16_p7 = scmp.ge.s32.totalorder %s1063_s21, 4   ;;  %s1416_s9 = smov %s956_s10 }
 0x25b   : > { %s1417_s10 = smov %s960_s11  ;;  %s1418_s11 = smov %s1094_s8 }
 0x25c   : > { %s1419_s12 = smov %s1063_s21  ;;  %18 = sbr.rel (!%p16_p7) target bundleno = 6 (0x6), region = 78 }
 0x263   :  { %656 = vsyncpa [#allocation3], 1 }
 0x264   :  { %658 = vsyncpa [#allocation3 + $0x1], 1 }
 0x265   :  { %659 = vsyncpa [#allocation6], 1 }
 0x266   :  { %660 = vsyncpa [#allocation4], 1 }
 0x267   :  { %662 = vsyncpa [#allocation4 + $0x1], 1 }

// kernel: tpu_custom_call.1
= control target key start
LH: loop header
LB: loop body
LE: loop exit
PB: predicated region body
PF: predicated region fallthrough
CT: control target
= control target key end

     0   :  { %s1256_s0 = inlined_call_operand.hbm [shape: f32[20], index: 0, kind: input, shape index: {}]   ;;  %s1257_s1 = inlined_call_operand.hbm [shape: f32[2,4,16,16], index: 1, kind: input, shape index: {}]   ;;  %s1258_s2 = inlined_call_operand.hbm [shape: f32[2,4,16,16], index: 2, kind: output, shape index: {}]  }
   0x1   :  { %s714_s11 = scalar_lea.hbm %s1256_s0, 16 }
   0x2   :  { %p715_p0 = scmp.ne.s32.totalorder %s1256_s0, %s714_s11  ;;  %p718_p1 = scmp.lt.u32.totalorder %s714_s11, %s1256_s0 }
   0x4   :  { %p720_p2 = pnand %p718_p1, %p715_p0 }
   0x6   :  { %723 = shalt.err (!%p720_p2)  }
   0x7   :  { %s840_s16 = smov [#allocation3]  }
   0x8   :  { %8 = dma.hbm_to_smem %s1256_s0, 16, %s840_s16, [#allocation2] }
   0x9   :  { %806 = dma.done.wait [#allocation2], 16 }
   0xa   :  { %807 = vsyncadd [#allocation2], 4294967280 }
   0xb   :  { %10 = sfence }
   0xc   :  { %11 = vsyncpa [#allocation5], 0 }
   0xd   :  { %13 = vsyncpa [#allocation5 + $0x1], 0 }
   0xe   :  { %14 = vsyncpa [#allocation6], 0 }
   0xf   :  { %16 = vsyncpa [#allocation6 + $0x1], 0  ;;  %s881_s19 = smov 0   ;;  %s883_s20 = smov 0  }
  0x10   :  { %s885_s21 = smov 0   ;;  %s887_s22 = smov 0  }
  0x11   :  { %s889_s23 = smov 0   ;;  %s891_s24 = smov 0  }
  0x12 LB: > { %s619_s0 = sadd.s32 4294967295, %s838_s24   ;;  %s620_s25 = sadd.s32 4294967294, %s838_s24   ;;  %s838_s24 = sphi %s891_s24, %s22_s24   ;;  %s834_s23 = sphi %s889_s23, %s1273_s23   ;;  %s830_s22 = sphi %s887_s22, %s1272_s22   ;;  %s826_s21 = sphi %s885_s21, %s1271_s21   ;;  %s822_s20 = sphi %s883_s20, %s1270_s20   ;;  %s818_s19 = sphi %s881_s19, %s1269_s19  }
  0x13   : > { %s34_s26 = sadd.s32 1, %s834_s23  ;;  %s43_s27 = sadd.s32 1, %s826_s21 }
  0x14   : > { %p36_p3 = scmp.ge.s32.totalorder %s34_s26, 2  ;;  %p50_p4 = scmp.ne.s32.totalorder %s826_s21, %s822_s20 }
  0x15   : > { %p51_p5 = scmp.eq.s32.totalorder %s838_s24, 0  ;;  %p56_p6 = scmp.ne.s32.totalorder %s822_s20, %s818_s19 }
  0x16   : > { %s1275_s26 = smov (%p36_p3, %s34_s26), 0  ;;  %p57_p8 = scmp.eq.s32.totalorder %s619_s0, 0 }
  0x17   : > { %p922_p7 = por %p51_p5, %p50_p4  ;;  %s38_s29 = ssub.s32 %s834_s23, %s1275_s26 }
  0x18   : > { %p82_p9 = scmp.eq.s32.totalorder %s619_s0, 1  ;;  %p41_p10 = scmp.eq.s32.totalorder %s38_s29, 0 }
  0x19   : > { %p928_p11 = por %p57_p8, %p56_p6  ;;  %p88_p13 = scmp.eq.s32.totalorder %s620_s25, 1 }
  0x1a   : > { %p932_p12 = por %p82_p9, %p50_p4  ;;  %p652_p2 = scmp.lt.s32.totalorder %s838_s24, 2 }
  0x1b   : > { %s937_s4 = scalar_select %p41_p10, %s826_s21, %s43_s27  }
  0x1c   : > { %s1262_s3 = scalar_select %p932_p12, 1, 0 }
  0x1d   : > { %p939_p0 = por %p88_p13, %p56_p6  ;;  %s108_s6 = sand.u32 1, %s826_s21  }
  0x1e   : > { %s623_s7 = sshll.u32 %s108_s6, 6  ;;  %s638_s8 = sshll.u32 %s834_s23, 10 }
  0x1f   : > { %s1263_s5 = scalar_select %p939_p0, 1, 0 }
  0x20   : > { %s950_s11 = scalar_lea.hbm %s1257_s1, %s638_s8  ;;  %s112_s12 = scalar_lea.vmem [#allocation4], %s623_s7 }
  0x21   : > { %s121_s13 = sshll.u32 %s112_s12, 4  ;;  %p956_p3 = pnand %p652_p2, %p922_p7  ;;  %s952_s13 = int_to_ptr.vmem [resolvable:$true] %s121_s13 }
  0x22   : > { %s961_s15 = scalar_lea.sflag [#allocation5], %s108_s6  ;;  %s724_s16 = scalar_lea.hbm %s950_s11, 1024 }
  0x23   : > { %p725_p5 = scmp.ne.s32.totalorder %s950_s11, %s724_s16  ;;  %p726_p6 = pneg %p956_p3 }
  0x24   : > { %s729_s0 = scalar_lea.hbm %s1257_s1, 2048  ;;  %p730_p7 = scmp.lt.u32.totalorder %s950_s11, %s1257_s1 }
  0x25   : > { %p727_p8 = pnand %p726_p6, %p725_p5  ;;  %p731_p10 = scmp.lt.u32.totalorder %s729_s0, %s724_s16 }
  0x26   : > { %p733_p2 = scmp.lt.u32.totalorder %s724_s16, %s950_s11 }
  0x27   : > { %p728_p9 = pneg %p727_p8  ;;  %p732_p13 = por %p731_p10, %p730_p7 }
  0x29   : > { %p734_p1 = por %p733_p2, %p732_p13 }
  0x2b   : > { %p735_p4 = pnand %p734_p1, %p728_p9 }
  0x2d   : > { %738 = shalt.err (!%p735_p4)
}
  0x2e   : > { %s739_s28 = scalar_lea.vmem %s952_s13, 1024  ;;  %s841_s29 = smov [#allocation4]  }
  0x2f   : > { %p740_p5 = scmp.ne.s32.totalorder %s952_s13, %s739_s28  ;;  %s744_s6 = sshll.u32 %s841_s29, 4  ;;  %s745_s6 = int_to_ptr.vmem [resolvable:$false] %s744_s6 }
  0x30   : > { %s746_s7 = scalar_lea.vmem %s745_s6, 2048  ;;  %p747_p12 = scmp.lt.s32.totalorder %s952_s13, %s745_s6 }
  0x31   : > { %p742_p8 = pnand %p740_p5, %p726_p6  ;;  %p748_p7 = scmp.lt.s32.totalorder %s746_s7, %s739_s28 }
  0x33   : > { %p743_p0 = pneg %p742_p8  ;;  %p749_p10 = por %p748_p7, %p747_p12 }
  0x35   : > { %p750_p13 = pnand %p749_p10, %p743_p0 }
  0x37   : > { %753 = shalt.err (!%p750_p13)
}
  0x38   : > { %s842_s8 = smov 128   ;;  %s843_s9 = smov 8  }
  0x39   : > { %647 = dma.hbm_to_vmem [thread:$0]  (!%p956_p3), %s950_s11, 1024, %s952_s13, %s961_s15, %s842_s8, %s842_s8, %s843_s9  }
  0x3a   : > { %p129_p1 = scmp.lt.s32.totalorder %s838_s24, 3  ;;  %p1265_p4 = scmp.ge.s32.totalorder %s838_s24, 1 }
  0x3c   : > { %p130_p6 = pnand %p1265_p4, %p129_p1 }
  0x3d   : > { %s993_s10 = sand.u32 (!%p130_p6), 1, %s822_s20  }
  0x3e   : > { %133 = sbr.rel (%p130_p6) target bundleno = 413 (0x19d), region = 24  ;;  %s627_s12 = sshll.u32 (!%p130_p6), %s993_s10, 6 }
  0x3f   : > { %s136_s16 = scalar_lea.sflag (!%p130_p6), [#allocation5], %s993_s10  ;;  %s139_s17 = scalar_lea.vmem (!%p130_p6), [#allocation4], %s627_s12 }
  0x45   : > { %809 = dma.done.wait (%p928_p11), %s136_s16, 1024  }
  0x46   : > { %811 = vsyncadd (%p928_p11), %s136_s16, 4294966272  ;;  %v1003_v0 = vld [vmem:[%s139_s17 + $0x10] sm:$0xff]  ;;  %v1005_v1 = vld [vmem:[%s139_s17] sm:$0xff]  ;;  %s844_s11 = smov 126   ;;  %s845_s30 = smov 2   ;;  %vm292_vm0 = vcmask 7168  }
  0x47   : > { %200 = vrot.lane.b32.xlu1 %v1003_v0, %s844_s11  ;;  %196 = vrot.lane.b32.xlu0 %v1005_v1, %s844_s11  ;;  %v1009_v2 = vld [vmem:[%s139_s17 + $0x18] sm:$0xff]  ;;  %v1011_v3 = vld [vmem:[%s139_s17 + $0x8] sm:$0xff]  ;;  %s846_s13 = smov 4   ;;  %s847_s14 = smov 6   ;;  %vm301_vm1 = vcmask 15360   ;;  %vm310_vm2 = vcmask 146432  }
  0x48   : > { %v1015_v4 = vld [vmem:[%s139_s17 + $0x28] sm:$0xff]  ;;  %v1017_v5 = vld [vmem:[%s139_s17 + $0x20] sm:$0xff]  ;;  %v1021_v6 = vld [vmem:[%s139_s17 + $0x38] sm:$0xff]  ;;  %s1060_s15 = smul.u32 10, %s830_s22  ;;  %vm319_vm3 = vcmask 154624   ;;  %s848_s28 = smov 127  }
  0x49   : > { %v1023_v7 = vld [vmem:[%s139_s17 + $0x30] sm:$0xff]  ;;  %s849_s9 = smov 125   ;;  %vm506_vm4 = vcmask 130048   ;;  %p1266_p12 = scmp.ne.s32.totalorder %s1262_s3, 0 }
  0x4a   : > { %s162_s18 = sadd.s32 1, %s1060_s15  ;;  %s172_s25 = sadd.s32 6, %s1060_s15 }
  0x4b   : > { %202 = vrot.lane.b32.xlu1 %v1009_v2, %s844_s11  ;;  %198 = vrot.lane.b32.xlu0 %v1011_v3, %s844_s11  ;;  %s163_s0 = sld [smem:[#allocation3 + %s162_s18]]  ;;  %s166_s29 = sadd.s32 3, %s1060_s15 }
  0x4c   : > { %s173_s27 = sld [smem:[#allocation3 + %s172_s25]]  ;;  %s176_s7 = sadd.s32 8, %s1060_s15 }
  0x4d   : > { %s167_s6 = sld [smem:[#allocation3 + %s166_s29]]  ;;  %s168_s16 = sadd.s32 4, %s1060_s15 }
  0x4e   : > { %s177_s8 = sld [smem:[#allocation3 + %s176_s7]]  ;;  %s170_s25 = sadd.s32 5, %s1060_s15 }
  0x4f   : > { %206 = vrot.lane.b32.xlu1 %v1015_v4, %s844_s11  ;;  %204 = vrot.lane.b32.xlu0 %v1017_v5, %s844_s11  ;;  %s169_s17 = sld [smem:[#allocation3 + %s168_s16]] }
  0x50   : > { %s161_s18 = sld [smem:[#allocation3 + %s1060_s15]] }
  0x51   : > { %v338_v36 = vstv %s163_s0 }
  0x52   : > { %v363_v61 = vstv %s173_s27  ;;  %s174_s27 = sadd.s32 7, %s1060_s15 }
  0x53   : > { %210 = vrot.lane.b32.xlu1 %v1021_v6, %s844_s11  ;;  %208 = vrot.lane.b32.xlu0 %v1023_v7, %s844_s11  ;;  %s178_s11 = sadd.s32 9, %s1060_s15  ;;  %s175_s29 = sld [smem:[#allocation3 + %s174_s27]] }
  0x57   : > { %222 = vrot.lane.b32.xlu1 %v1011_v3, %s845_s30  ;;  %220 = vrot.lane.b32.xlu0 %v1005_v1, %s845_s30 }
  0x5b   : > { %226 = vrot.lane.b32.xlu1 %v1009_v2, %s845_s30  ;;  %224 = vrot.lane.b32.xlu0 %v1003_v0, %s845_s30 }
  0x5f   : > { %230 = vrot.lane.b32.xlu1 %v1015_v4, %s845_s30  ;;  %228 = vrot.lane.b32.xlu0 %v1017_v5, %s845_s30 }
  0x63   : > { %234 = vrot.lane.b32.xlu1 %v1021_v6, %s845_s30  ;;  %232 = vrot.lane.b32.xlu0 %v1023_v7, %s845_s30  ;;  %s179_s30 = sld [smem:[#allocation3 + %s178_s11]] }
  0x67   : > { %246 = vrot.lane.b32.xlu1 %v1011_v3, %s846_s13  ;;  %244 = vrot.lane.b32.xlu0 %v1005_v1, %s846_s13 }
  0x6b   : > { %250 = vrot.lane.b32.xlu1 %v1009_v2, %s846_s13  ;;  %248 = vrot.lane.b32.xlu0 %v1003_v0, %s846_s13 }
  0x6f   : > { %254 = vrot.lane.b32.xlu1 %v1015_v4, %s846_s13  ;;  %252 = vrot.lane.b32.xlu0 %v1017_v5, %s846_s13 }
  0x73   : > { %258 = vrot.lane.b32.xlu1 %v1021_v6, %s846_s13  ;;  %256 = vrot.lane.b32.xlu0 %v1023_v7, %s846_s13  ;;  %s850_s13 = smov 124  }
  0x77   : > { %270 = vrot.lane.b32.xlu1 %v1011_v3, %s847_s14  ;;  %268 = vrot.lane.b32.xlu0 %v1005_v1, %s847_s14 }
  0x7b   : > { %274 = vrot.lane.b32.xlu1 %v1009_v2, %s847_s14  ;;  %272 = vrot.lane.b32.xlu0 %v1003_v0, %s847_s14 }
  0x7f   : > { %278 = vrot.lane.b32.xlu1 %v1015_v4, %s847_s14  ;;  %276 = vrot.lane.b32.xlu0 %v1017_v5, %s847_s14 }
  0x83   : > { %282 = vrot.lane.b32.xlu1 %v1021_v6, %s847_s14  ;;  %280 = vrot.lane.b32.xlu0 %v1023_v7, %s847_s14  ;;  %s164_s14 = sadd.s32 2, %s1060_s15  ;;  %s1180_s15 = scalar_lea.vmem [#allocation7], %s627_s12 }
  0x84   : > { %s165_s0 = sld [smem:[#allocation3 + %s164_s14]]  ;;  %s639_s12 = sshll.u32 %s830_s22, 10 }
  0x85   : > { %s517_s22 = scalar_lea.sflag [#allocation6], %s993_s10 }
  0xb9   : > { %v201_v8 = vpop.permute.xlu1 %200  ;;  %v197_v9 = vpop.permute.xlu0 %196 }
  0xba   : > { %v293_v32 = vsel %vm292_vm0, %v197_v9, %v1005_v1  ;;  %v295_v43 = vsel %vm292_vm0, %v201_v8, %v1003_v0 }
  0xbd   : > { %v203_v10 = vpop.permute.xlu1 %202  ;;  %v199_v11 = vpop.permute.xlu0 %198 }
  0xbe   : > { %v294_v33 = vsel %vm292_vm0, %v199_v11, %v1011_v3  ;;  %v296_v44 = vsel %vm292_vm0, %v203_v10, %v1009_v2 }
  0xc1   : > { %v207_v12 = vpop.permute.xlu1 %206  ;;  %v205_v13 = vpop.permute.xlu0 %204 }
  0xc2   : > { %v298_v55 = vsel %vm292_vm0, %v207_v12, %v1015_v4  ;;  %v297_v56 = vsel %vm292_vm0, %v205_v13, %v1017_v5 }
  0xc5   : > { %v1051_v14 = vpop.permute.xlu1 %210  ;;  %v1053_v15 = vpop.permute.xlu0 %208 }
  0xc6   : > { %v300_v12 = vsel %vm292_vm0, %v1051_v14, %v1021_v6  ;;  %v299_v13 = vsel %vm292_vm0, %v1053_v15, %v1023_v7 }
  0xc9   : > { %v223_v16 = vpop.permute.xlu1 %222  ;;  %v221_v17 = vpop.permute.xlu0 %220 }
  0xca   : > { %v303_v34 = vsel %vm301_vm1, %v294_v33, %v223_v16  ;;  %v302_v35 = vsel %vm301_vm1, %v293_v32, %v221_v17 }
  0xcd   : > { %v227_v18 = vpop.permute.xlu1 %226  ;;  %v225_v19 = vpop.permute.xlu0 %224 }
  0xce   : > { %v305_v47 = vsel %vm301_vm1, %v296_v44, %v227_v18  ;;  %v304_v48 = vsel %vm301_vm1, %v295_v43, %v225_v19  ;;  %v481_v43 = vstv %s179_s30 }
  0xd1   : > { %v231_v20 = vpop.permute.xlu1 %230  ;;  %v229_v21 = vpop.permute.xlu0 %228 }
  0xd2   : > { %v307_v59 = vsel %vm301_vm1, %v298_v55, %v231_v20  ;;  %v306_v60 = vsel %vm301_vm1, %v297_v56, %v229_v21 }
  0xd5   : > { %v1055_v22 = vpop.permute.xlu1 %234  ;;  %v1057_v23 = vpop.permute.xlu0 %232 }
  0xd6   : > { %v309_v18 = vsel %vm301_vm1, %v300_v12, %v1055_v22  ;;  %v308_v19 = vsel %vm301_vm1, %v299_v13, %v1057_v23 }
  0xd9   : > { %v247_v24 = vpop.permute.xlu1 %246  ;;  %v245_v25 = vpop.permute.xlu0 %244 }
  0xda   : > { %v312_v37 = vsel %vm310_vm2, %v303_v34, %v247_v24  ;;  %v311_v38 = vsel %vm310_vm2, %v302_v35, %v245_v25 }
  0xdd   : > { %v251_v26 = vpop.permute.xlu1 %250  ;;  %v249_v27 = vpop.permute.xlu0 %248 }
  0xde   : > { %v314_v49 = vsel %vm310_vm2, %v305_v47, %v251_v26  ;;  %v313_v50 = vsel %vm310_vm2, %v304_v48, %v249_v27  ;;  %v406_v26 = vstv %s167_s6  ;;  %s532_s6 = sshll.u32 %s1180_s15, 4  ;;  %s1203_s6 = int_to_ptr.vmem [resolvable:$true] %s532_s6 }
  0xdf   : > { %s754_s16 = scalar_lea.vmem %s1203_s6, 1024 }
  0xe0   : > { %p755_p11 = scmp.ne.s32.totalorder %s1203_s6, %s754_s16 }
  0xe1   : > { %v255_v28 = vpop.permute.xlu1 %254  ;;  %v253_v29 = vpop.permute.xlu0 %252 }
  0xe2   : > { %v316_v62 = vsel %vm310_vm2, %v307_v59, %v255_v28  ;;  %v315_v63 = vsel %vm310_vm2, %v306_v60, %v253_v29  ;;  %v328_v60 = vstv %s161_s18  ;;  %p756_p0 = pnand %p755_p11, %p1266_p12 }
  0xe4   : > { %p757_p3 = pneg %p756_p0 }
  0xe5   : > { %v259_v30 = vpop.permute.xlu1 %258  ;;  %v257_v31 = vpop.permute.xlu0 %256 }
  0xe6   : > { %v318_v20 = vsel %vm310_vm2, %v309_v18, %v259_v30  ;;  %v317_v21 = vsel %vm310_vm2, %v308_v19, %v257_v31  ;;  %v431_v31 = vstv %s177_s8 }
  0xe9   : > { %v271_v39 = vpop.permute.xlu1 %270  ;;  %v269_v40 = vpop.permute.xlu0 %268 }
  0xea   : > { %v1073_v41 = vsel %vm319_vm3, %v312_v37, %v271_v39  ;;  %v1076_v42 = vsel %vm319_vm3, %v311_v38, %v269_v40 }
  0xeb   : > { %v340_v45 = vmul.f32 %v338_v36, %v1073_v41  ;;  %v339_v46 = vmul.f32 %v338_v36, %v1076_v42  ;;  %v408_v27 = vmul.f32 %v406_v26, %v1073_v41  ;;  %v407_v28 = vmul.f32 %v406_v26, %v1076_v42 }
  0xed   : > { %v275_v51 = vpop.permute.xlu1 %274  ;;  %v273_v52 = vpop.permute.xlu0 %272  ;;  %349 = vrot.lane.b32.xlu1 %v340_v45, %s848_s28  ;;  %347 = vrot.lane.b32.xlu0 %v339_v46, %s848_s28 }
  0xee   : > { %v1092_v53 = vsel %vm319_vm3, %v314_v49, %v275_v51  ;;  %v1095_v54 = vsel %vm319_vm3, %v313_v50, %v273_v52 }
  0xef   : > { %v342_v57 = vmul.f32 %v338_v36, %v1092_v53  ;;  %v341_v58 = vmul.f32 %v338_v36, %v1095_v54  ;;  %v410_v29 = vmul.f32 %v406_v26, %v1092_v53  ;;  %v409_v30 = vmul.f32 %v406_v26, %v1095_v54 }
  0xf0   : > { %v456_v36 = vstv %s169_s17  ;;  %s851_s17 = smov [#allocation7]  }
  0xf1   : > { %v279_v8 = vpop.permute.xlu1 %278  ;;  %v277_v9 = vpop.permute.xlu0 %276  ;;  %353 = vrot.lane.b32.xlu1 %v342_v57, %s848_s28  ;;  %351 = vrot.lane.b32.xlu0 %v341_v58, %s848_s28  ;;  %v458_v37 = vmul.f32 %v456_v36, %v1073_v41  ;;  %v457_v38 = vmul.f32 %v456_v36, %v1076_v42  ;;  %v460_v39 = vmul.f32 %v456_v36, %v1092_v53  ;;  %s758_s11 = sshll.u32 %s851_s17, 4  ;;  %s759_s11 = int_to_ptr.vmem [resolvable:$false] %s758_s11 }
  0xf2   : > { %v1110_v10 = vsel %vm319_vm3, %v316_v62, %v279_v8  ;;  %v1113_v11 = vsel %vm319_vm3, %v315_v63, %v277_v9  ;;  %v459_v40 = vmul.f32 %v456_v36, %v1095_v54  ;;  %v388_v63 = vstv %s165_s0  ;;  %s760_s30 = scalar_lea.vmem %s759_s11, 2048  ;;  %p761_p9 = scmp.lt.s32.totalorder %s1203_s6, %s759_s11 }
  0xf3   : > { %v365_v16 = vmul.f32 %v363_v61, %v1110_v10  ;;  %v364_v17 = vmul.f32 %v363_v61, %v1113_v11  ;;  %v433_v32 = vmul.f32 %v431_v31, %v1110_v10  ;;  %v432_v33 = vmul.f32 %v431_v31, %v1113_v11  ;;  %p762_p2 = scmp.lt.s32.totalorder %s760_s30, %s754_s16 }
  0xf4   : > { %v483_v44 = vmul.f32 %v481_v43, %v1110_v10  ;;  %v482_v45 = vmul.f32 %v481_v43, %v1113_v11  ;;  %v330_v8 = vmul.f32 %v328_v60, %v1073_v41  ;;  %v329_v9 = vmul.f32 %v328_v60, %v1076_v42 }
  0xf5   : > { %v283_v24 = vpop.permute.xlu1 %282  ;;  %v281_v14 = vpop.permute.xlu0 %280  ;;  %374 = vrot.lane.b32.xlu1 %v365_v16, %s848_s28  ;;  %372 = vrot.lane.b32.xlu0 %v364_v17, %s848_s28  ;;  %v390_v18 = vmul.f32 %v388_v63, %v1011_v3  ;;  %v389_v19 = vmul.f32 %v388_v63, %v1005_v1  ;;  %v397_v41 = vstv %s175_s29  ;;  %p763_p5 = por %p762_p2, %p761_p9 }
  0xf6   : > { %v1133_v15 = vsel %vm319_vm3, %v318_v20, %v283_v24  ;;  %v1136_v22 = vsel %vm319_vm3, %v317_v21, %v281_v14  ;;  %v332_v20 = vmul.f32 %v328_v60, %v1092_v53  ;;  %v331_v21 = vmul.f32 %v328_v60, %v1095_v54 }
  0xf7   : > { %v367_v23 = vmul.f32 %v363_v61, %v1133_v15  ;;  %v366_v25 = vmul.f32 %v363_v61, %v1136_v22  ;;  %v435_v34 = vmul.f32 %v431_v31, %v1133_v15  ;;  %v434_v35 = vmul.f32 %v431_v31, %v1136_v22  ;;  %p764_p8 = pnand %p763_p5, %p757_p3 }
  0xf8   : > { %v485_v46 = vmul.f32 %v481_v43, %v1133_v15  ;;  %v484_v47 = vmul.f32 %v481_v43, %v1136_v22  ;;  %v392_v14 = vmul.f32 %v388_v63, %v1009_v2  ;;  %v399_v54 = vmul.f32 %v397_v41, %v1015_v4 }
  0xf9   : > { %378 = vrot.lane.b32.xlu1 %v367_v23, %s848_s28  ;;  %376 = vrot.lane.b32.xlu0 %v366_v25, %s848_s28  ;;  %s171_s28 = sld [smem:[#allocation3 + %s170_s25]]  ;;  %v391_v23 = vmul.f32 %v388_v63, %v1003_v0  ;;  %v398_v0 = vmul.f32 %v397_v41, %v1017_v5 }
  0xfd   : > { %417 = vrot.lane.b32.xlu1 %v408_v27, %s849_s9  ;;  %415 = vrot.lane.b32.xlu0 %v407_v28, %s849_s9 }
  0xff   : > { %v333_v24 = vstv %s171_s28 }
 0x100   : > { %v335_v3 = vmul.f32 %v333_v24, %v1110_v10  ;;  %v334_v1 = vmul.f32 %v333_v24, %v1113_v11  ;;  %v337_v10 = vmul.f32 %v333_v24, %v1133_v15  ;;  %v336_v11 = vmul.f32 %v333_v24, %v1136_v22 }
 0x101   : > { %421 = vrot.lane.b32.xlu1 %v410_v29, %s849_s9  ;;  %419 = vrot.lane.b32.xlu0 %v409_v30, %s849_s9  ;;  %v400_v15 = vmul.f32 %v397_v41, %v1023_v7 }
 0x105   : > { %442 = vrot.lane.b32.xlu1 %v433_v32, %s849_s9  ;;  %440 = vrot.lane.b32.xlu0 %v432_v33, %s849_s9 }
 0x109   : > { %446 = vrot.lane.b32.xlu1 %v435_v34, %s849_s9  ;;  %444 = vrot.lane.b32.xlu0 %v434_v35, %s849_s9  ;;  %s1201_s9 = scalar_lea.hbm %s1258_s2, %s639_s12 }
 0x10d   : > { %467 = vrot.lane.b32.xlu1 %v458_v37, %s850_s13  ;;  %465 = vrot.lane.b32.xlu0 %v457_v38, %s850_s13 }
 0x111   : > { %471 = vrot.lane.b32.xlu1 %v460_v39, %s850_s13  ;;  %469 = vrot.lane.b32.xlu0 %v459_v40, %s850_s13  ;;  %v401_v40 = vmul.f32 %v397_v41, %v1021_v6 }
 0x115   : > { %492 = vrot.lane.b32.xlu1 %v483_v44, %s850_s13  ;;  %490 = vrot.lane.b32.xlu0 %v482_v45, %s850_s13 }
 0x119   : > { %496 = vrot.lane.b32.xlu1 %v485_v46, %s850_s13  ;;  %494 = vrot.lane.b32.xlu0 %v484_v47, %s850_s13 }
 0x15f   : > { %v350_v48 = vpop.permute.xlu1 %349  ;;  %v348_v49 = vpop.permute.xlu0 %347 }
 0x160   : > { %v360_v16 = vadd.f32 %v350_v48, %v330_v8  ;;  %v359_v17 = vadd.f32 %v348_v49, %v329_v9 }
 0x162   : > { %v394_v28 = vadd.f32 %v390_v18, %v360_v16  ;;  %v393_v29 = vadd.f32 %v389_v19, %v359_v17 }
 0x163   : > { %v354_v50 = vpop.permute.xlu1 %353  ;;  %v352_v51 = vpop.permute.xlu0 %351 }
 0x164   : > { %v362_v26 = vadd.f32 %v354_v50, %v332_v20  ;;  %v361_v27 = vadd.f32 %v352_v51, %v331_v21 }
 0x166   : > { %v396_v34 = vadd.f32 %v392_v14, %v362_v26  ;;  %v395_v35 = vadd.f32 %v391_v23, %v361_v27 }
 0x167   : > { %v375_v52 = vpop.permute.xlu1 %374  ;;  %v373_v55 = vpop.permute.xlu0 %372 }
 0x168   : > { %v385_v31 = vadd.f32 %v375_v52, %v335_v3  ;;  %v384_v2 = vadd.f32 %v373_v55, %v334_v1 }
 0x16a   : > { %v403_v4 = vadd.f32 %v399_v54, %v385_v31  ;;  %v402_v5 = vadd.f32 %v398_v0, %v384_v2 }
 0x16b   : > { %v379_v56 = vpop.permute.xlu1 %378  ;;  %v377_v57 = vpop.permute.xlu0 %376 }
 0x16c   : > { %v387_v44 = vadd.f32 %v379_v56, %v337_v10  ;;  %v386_v45 = vadd.f32 %v377_v57, %v336_v11 }
 0x16e   : > { %v405_v51 = vadd.f32 %v401_v40, %v387_v44  ;;  %v404_v7 = vadd.f32 %v400_v15, %v386_v45 }
 0x16f   : > { %v418_v58 = vpop.permute.xlu1 %417  ;;  %v416_v59 = vpop.permute.xlu0 %415 }
 0x170   : > { %v428_v30 = vadd.f32 %v418_v58, %v394_v28  ;;  %v427_v53 = vadd.f32 %v416_v59, %v393_v29 }
 0x173   : > { %v422_v61 = vpop.permute.xlu1 %421  ;;  %v420_v62 = vpop.permute.xlu0 %419 }
 0x174   : > { %v430_v38 = vadd.f32 %v422_v61, %v396_v34  ;;  %v429_v39 = vadd.f32 %v420_v62, %v395_v35 }
 0x177   : > { %v443_v12 = vpop.permute.xlu1 %442  ;;  %v441_v13 = vpop.permute.xlu0 %440 }
 0x178   : > { %v453_v48 = vadd.f32 %v443_v12, %v403_v4  ;;  %v452_v49 = vadd.f32 %v441_v13, %v402_v5 }
 0x17b   : > { %v447_v25 = vpop.permute.xlu1 %446  ;;  %v445_v42 = vpop.permute.xlu0 %444 }
 0x17c   : > { %v455_v56 = vadd.f32 %v447_v25, %v405_v51  ;;  %v454_v57 = vadd.f32 %v445_v42, %v404_v7 }
 0x17f   : > { %v468_v32 = vpop.permute.xlu1 %467  ;;  %v466_v33 = vpop.permute.xlu0 %465 }
 0x180   : > { %v478_v36 = vadd.f32 %v468_v32, %v428_v30  ;;  %v477_v37 = vadd.f32 %v466_v33, %v427_v53 }
 0x182   : > { %508 = vst.msk [vmem:[%s1180_s15 + $0x8] sm:$0xff] %vm506_vm4, %v478_v36  ;;  %507 = vst.msk [vmem:[%s1180_s15] sm:$0xff] %vm506_vm4, %v477_v37 }
 0x183   : > { %v472_v22 = vpop.permute.xlu1 %471  ;;  %v470_v43 = vpop.permute.xlu0 %469 }
 0x184   : > { %v480_v46 = vadd.f32 %v472_v22, %v430_v38  ;;  %v479_v47 = vadd.f32 %v470_v43, %v429_v39 }
 0x186   : > { %510 = vst.msk [vmem:[%s1180_s15 + $0x18] sm:$0xff] %vm506_vm4, %v480_v46  ;;  %509 = vst.msk [vmem:[%s1180_s15 + $0x10] sm:$0xff] %vm506_vm4, %v479_v47 }
 0x187   : > { %v493_v50 = vpop.permute.xlu1 %492  ;;  %v491_v6 = vpop.permute.xlu0 %490 }
 0x188   : > { %v503_v52 = vadd.f32 %v493_v50, %v453_v48  ;;  %v502_v55 = vadd.f32 %v491_v6, %v452_v49 }
 0x18a   : > { %630 = vst.msk [vmem:[%s1180_s15 + $0x28] sm:$0xff] %vm506_vm4, %v503_v52  ;;  %629 = vst.msk [vmem:[%s1180_s15 + $0x20] sm:$0xff] %vm506_vm4, %v502_v55 }
 0x18b   : > { %v497_v58 = vpop.permute.xlu1 %496  ;;  %v495_v59 = vpop.permute.xlu0 %494 }
 0x18c   : > { %v505_v60 = vadd.f32 %v497_v58, %v455_v56  ;;  %v504_v61 = vadd.f32 %v495_v59, %v454_v57 }
 0x18e   : > { %632 = vst.msk [vmem:[%s1180_s15 + $0x38] sm:$0xff] %vm506_vm4, %v505_v60  ;;  %631 = vst.msk [vmem:[%s1180_s15 + $0x30] sm:$0xff] %vm506_vm4, %v504_v61 }
 0x18f   : > { %767 = shalt.err (!%p764_p8)
}
 0x190   : > { %s768_s13 = scalar_lea.hbm %s1201_s9, 1024  ;;  %s772_s0 = scalar_lea.hbm %s1258_s2, 2048 }
 0x191   : > { %p769_p7 = scmp.ne.s32.totalorder %s1201_s9, %s768_s13  ;;  %p773_p1 = scmp.lt.u32.totalorder %s1201_s9, %s1258_s2 }
 0x192   : > { %p774_p4 = scmp.lt.u32.totalorder %s772_s0, %s768_s13  ;;  %p776_p11 = scmp.lt.u32.totalorder %s768_s13, %s1201_s9 }
 0x193   : > { %p770_p10 = pnand %p769_p7, %p1266_p12 }
 0x194   : > { %p775_p6 = por %p774_p4, %p773_p1 }
 0x195   : > { %p771_p13 = pneg %p770_p10 }
 0x196   : > { %p777_p0 = por %p776_p11, %p775_p6 }
 0x198   : > { %p778_p3 = pnand %p777_p0, %p771_p13 }
 0x19a   : > { %781 = shalt.err (!%p778_p3)
}
 0x19b   : > { %s852_s28 = smov 128   ;;  %s853_s29 = smov 8  }
 0x19c   : > { %642 = dma.vmem_to_hbm [thread:$0]  (%p1266_p12), %s1203_s6, 1024, %s1201_s9, %s517_s22, %s852_s28, %s852_s28, %s853_s29  }
 0x19d PF: > { %s547_s15 = sand.u32 1, %s818_s19   ;;  %p1267_p9 = scmp.ne.s32.totalorder %s1263_s5, 0 }
 0x19e   : > { %p1268_p2 = scmp.ge.s32.totalorder %s838_s24, 2  ;;  %s548_s12 = scalar_lea.sflag [#allocation6], %s547_s15 }
 0x1a0   : > { %p649_p5 = pnand %p1268_p2, %p1267_p9 }
 0x1a2   : > { %813 = dma.done.wait (!%p649_p5), %s548_s12, 1024  }
 0x1a3   : > { %815 = vsyncadd (!%p649_p5), %s548_s12, 4294966272  ;;  %s22_s24 = sadd.s32 1, %s838_s24   ;;  %s1269_s19 = smov %s822_s20 }
 0x1a4   : > { %p19_p8 = scmp.ge.s32.totalorder %s22_s24, 4   ;;  %s1270_s20 = smov %s826_s21 }
 0x1a5   : > { %s1271_s21 = smov %s937_s4  ;;  %s1272_s22 = smov %s834_s23 }
 0x1a6   : > { %s1273_s23 = smov %s1275_s26  ;;  %21 = sbr.rel (!%p19_p8) target bundleno = 18 (0x12), region = 70 }
 0x1ad   :  { %553 = vsyncpa [#allocation5], 1 }
 0x1ae   :  { %555 = vsyncpa [#allocation5 + $0x1], 1 }
 0x1af   :  { %556 = vsyncpa [#allocation6], 1 }
 0x1b0   :  { %558 = vsyncpa [#allocation6 + $0x1], 1 }

</bundles_post_ra>
